<compile_context>
chip_gen: v7x
topology: tpu7x:2x2x1
jax: 0.10.0
libtpu: 0.0.40
codegen_flags: <defaults>
</compile_context>

<pallas_src>
import math
import functools

import jax
import jax.numpy as jnp
from jax.experimental import pallas as pl
from jax.experimental.pallas import tpu as pltpu


# ---------------------------------------------------------------------------
# Fused kernel: prologue (scale + positional encoding) + L encoder layers,
# iterated in-kernel with lax.fori_loop.  Grid = (num_batch_blocks,).
# ---------------------------------------------------------------------------
def _te_model_kernel(x_ref, pe_ref,
                     in_w_ref, in_b_ref, out_w_ref, out_b_ref,
                     ln1_w_ref, ln1_b_ref,
                     ff1_w_ref, ff1_b_ref, ff2_w_ref, ff2_b_ref,
                     ln2_w_ref, ln2_b_ref,
                     o_ref, *, nhead, seq_len, scale):
    M, E = x_ref.shape            # M = Nb * S (batch-block rows, folded)
    S = seq_len
    Nb = M // S
    H = nhead
    dh = E // H
    L = in_w_ref.shape[0]

    # ---- prologue: x * sqrt(ninp) + positional encoding (pe pre-tiled host-side)
    y0 = x_ref[...] * scale + pe_ref[...]                       # (M, E) f32

    # ---- additive causal mask, built ONCE per grid step (not per layer)
    row = jax.lax.broadcasted_iota(jnp.int32, (S, S), 0)
    col = jax.lax.broadcasted_iota(jnp.int32, (S, S), 1)
    maskf = jnp.where(col <= row, 0.0, -1e30).astype(jnp.float32)

    inv_sqrt_dh = 1.0 / math.sqrt(dh)

    def layer_body(l, y):
        # per-layer weights: dynamic first-axis index into VMEM-resident stacks
        w_in = in_w_ref[l]          # (E, 3E)  bf16, pre-transposed (x @ W)
        b_in = in_b_ref[l]          # (1, 3E)  f32
        w_out = out_w_ref[l]        # (E, E)   bf16
        b_out = out_b_ref[l]        # (1, E)   f32
        g1, be1 = ln1_w_ref[l], ln1_b_ref[l]
        w1, b1 = ff1_w_ref[l], ff1_b_ref[l]
        w2, b2 = ff2_w_ref[l], ff2_b_ref[l]
        g2, be2 = ln2_w_ref[l], ln2_b_ref[l]

        # ---- QKV projection: one (M, E) @ (E, 3E) matmul, bf16 in / f32 acc
        qkv = jnp.dot(y.astype(jnp.bfloat16), w_in,
                      preferred_element_type=jnp.float32) + b_in       # (M, 3E)
        q = qkv[:, 0 * E:1 * E]
        k = qkv[:, 1 * E:2 * E]
        v = qkv[:, 2 * E:3 * E]

        # (batch, head)-stacked views -> (G = Nb*H, S, dh); batched einsums keep
        # attention separated per batch element and per head.
        def split(t):
            return jnp.stack(
                [t[b * S:(b + 1) * S, h * dh:(h + 1) * dh]
                 for b in range(Nb) for h in range(H)], axis=0)

        q3 = split(q).astype(jnp.bfloat16)
        k3 = split(k).astype(jnp.bfloat16)
        v3 = split(v).astype(jnp.bfloat16)

        s = jnp.einsum('gqd,gkd->gqk', q3, k3,
                       preferred_element_type=jnp.float32) * inv_sqrt_dh
        s = s + maskf[None, :, :]
        s = s - jnp.max(s, axis=-1, keepdims=True)
        p = jnp.exp(s)
        p = p * pl.reciprocal(jnp.sum(p, axis=-1, keepdims=True), approx=True)
        ctx = jnp.einsum('gqk,gkd->gqd', p.astype(jnp.bfloat16), v3,
                         preferred_element_type=jnp.float32)            # (G, S, dh)

        attn = jnp.concatenate(
            [jnp.concatenate([ctx[b * H + h] for h in range(H)], axis=-1)
             for b in range(Nb)], axis=0)                               # (M, E)
        attn = jnp.dot(attn.astype(jnp.bfloat16), w_out,
                       preferred_element_type=jnp.float32) + b_out

        # ---- residual + LayerNorm 1 (f32)
        y1 = y + attn
        mu1 = jnp.mean(y1, axis=-1, keepdims=True)
        var1 = jnp.mean((y1 - mu1) ** 2, axis=-1, keepdims=True)
        y1 = (y1 - mu1) * jax.lax.rsqrt(var1 + 1e-5) * g1 + be1

        # ---- feed-forward (ReLU), bf16 matmuls / f32 accumulate
        h1 = jnp.dot(y1.astype(jnp.bfloat16), w1,
                     preferred_element_type=jnp.float32) + b1
        h1 = jnp.maximum(h1, 0.0)
        h2 = jnp.dot(h1.astype(jnp.bfloat16), w2,
                     preferred_element_type=jnp.float32) + b2

        # ---- residual + LayerNorm 2 (f32)
        z = y1 + h2
        mu2 = jnp.mean(z, axis=-1, keepdims=True)
        var2 = jnp.mean((z - mu2) ** 2, axis=-1, keepdims=True)
        z = (z - mu2) * jax.lax.rsqrt(var2 + 1e-5) * g2 + be2
        return z

    y = jax.lax.fori_loop(0, L, layer_body, y0)
    o_ref[...] = y.astype(o_ref.dtype)


def te_model_forward(src, pe, stacked, ninp, nhead, batch_block=None):
    """src: (S, N, E) f32.  pe: (>=S, E) f32.  stacked: dict of (L, ...) weights."""
    S, N, E = src.shape

    Nb = N if batch_block is None else min(batch_block, N)
    assert N % Nb == 0, "batch must be divisible by the batch block"
    grid = (N // Nb,)

    # Batch-major, row-folded layout: row r = b*S + s.  Each grid step reads one
    # contiguous (Nb*S, E) HBM block and every matmul sees M = Nb*S rows.
    x2 = jnp.transpose(src, (1, 0, 2)).reshape(N * S, E)
    pe_block = jnp.tile(pe[:S], (Nb, 1))                         # (Nb*S, E)

    names = ("in_w", "in_b", "out_w", "out_b", "ln1_w", "ln1_b",
             "ff1_w", "ff1_b", "ff2_w", "ff2_b", "ln2_w", "ln2_b")
    weights = [stacked[n] for n in names]

    def resident_spec(a):                 # whole stacked array, VMEM-resident
        nd = a.ndim
        return pl.BlockSpec(a.shape, lambda i, _nd=nd: (0,) * _nd)

    in_specs = ([pl.BlockSpec((Nb * S, E), lambda i: (i, 0)),     # batch block
                 pl.BlockSpec((Nb * S, E), lambda i: (0, 0))]     # tiled pos-enc
                + [resident_spec(w) for w in weights])
    out_spec = pl.BlockSpec((Nb * S, E), lambda i: (i, 0))

    io_bytes = (sum(int(a.size) * a.dtype.itemsize for a in [x2, pe_block] + weights)
                + N * S * E * 4)
    vmem_limit = int(min(48 * 2 ** 20, max(16 * 2 ** 20, 4 * io_bytes)))

    out = pl.pallas_call(
        functools.partial(_te_model_kernel, nhead=nhead, seq_len=S,
                          scale=math.sqrt(ninp)),
        out_shape=jax.ShapeDtypeStruct((N * S, E), jnp.float32),
        grid=grid,
        in_specs=in_specs,
        out_specs=out_spec,
        compiler_params=pltpu.CompilerParams(
            dimension_semantics=("parallel",),
            vmem_limit_bytes=vmem_limit),
    )(x2, pe_block, *weights)

    return jnp.transpose(out.reshape(N, S, E), (1, 0, 2))        # back to (S, N, E)


# ---------------------------------------------------------------------------
# Parameter / buffer construction (deterministic, host side)
# ---------------------------------------------------------------------------
def make_positional_encoding(max_len, d_model):
    position = jnp.arange(max_len, dtype=jnp.float32)[:, None]
    div_term = jnp.exp(jnp.arange(0, d_model, 2, dtype=jnp.float32)
                       * (-math.log(10000.0) / d_model))
    pe = jnp.zeros((max_len, d_model), dtype=jnp.float32)
    pe = pe.at[:, 0::2].set(jnp.sin(position * div_term))
    pe = pe.at[:, 1::2].set(jnp.cos(position * div_term))
    return pe                                         # (max_len, d_model)


def init_stacked_params(key, nlayers, ninp, nhid):
    """Matmul weights stored PRE-TRANSPOSED (x @ W layout) and in bf16; biases and
    LayerNorm params in f32.  NOTE: real PyTorch Linear / in_proj weights are
    stored (out, in) — transpose host-side when porting checkpoints."""
    scale = 0.05
    layer_keys = jax.random.split(key, nlayers)

    def one(k):
        ks = jax.random.split(k, 4)
        bf = jnp.bfloat16
        return {
            "in_w":  (scale * jax.random.normal(ks[0], (ninp, 3 * ninp), jnp.float32)).astype(bf),
            "in_b":  jnp.zeros((1, 3 * ninp), jnp.float32),
            "out_w": (scale * jax.random.normal(ks[1], (ninp, ninp), jnp.float32)).astype(bf),
            "out_b": jnp.zeros((1, ninp), jnp.float32),
            "ln1_w": jnp.ones((1, ninp), jnp.float32),
            "ln1_b": jnp.zeros((1, ninp), jnp.float32),
            "ff1_w": (scale * jax.random.normal(ks[2], (ninp, nhid), jnp.float32)).astype(bf),
            "ff1_b": jnp.zeros((1, nhid), jnp.float32),
            "ff2_w": (scale * jax.random.normal(ks[3], (nhid, ninp), jnp.float32)).astype(bf),
            "ff2_b": jnp.zeros((1, ninp), jnp.float32),
            "ln2_w": jnp.ones((1, ninp), jnp.float32),
            "ln2_b": jnp.zeros((1, ninp), jnp.float32),
        }

    per_layer = [one(k) for k in layer_keys]
    return {n: jnp.stack([p[n] for p in per_layer], axis=0) for n in per_layer[0]}


# ---------------------------------------------------------------------------
# Pure-JAX reference (f32) mirroring TeModel.forward in eval mode
# ---------------------------------------------------------------------------
def _layer_norm(x, g, b, eps=1e-5):
    mu = jnp.mean(x, axis=-1, keepdims=True)
    var = jnp.mean((x - mu) ** 2, axis=-1, keepdims=True)
    return (x - mu) * jax.lax.rsqrt(var + eps) * g + b


def te_model_reference(src, pe, stacked, ninp, nhead):
    S, N, E = src.shape
    H = nhead
    dh = E // H
    L = stacked["in_w"].shape[0]

    y = src * math.sqrt(ninp) + pe[:S][:, None, :]
    mask = jnp.where(jnp.arange(S)[None, :] <= jnp.arange(S)[:, None], 0.0, -jnp.inf)

    for l in range(L):
        w_in = stacked["in_w"][l].astype(jnp.float32)
        qkv = jnp.einsum('sne,ef->snf', y, w_in) + stacked["in_b"][l][0]
        q, k, v = qkv[..., :E], qkv[..., E:2 * E], qkv[..., 2 * E:]
        q = q.reshape(S, N, H, dh)
        k = k.reshape(S, N, H, dh)
        v = v.reshape(S, N, H, dh)
        s = jnp.einsum('qnhd,knhd->nhqk', q, k) / math.sqrt(dh) + mask
        p = jax.nn.softmax(s, axis=-1)
        ctx = jnp.einsum('nhqk,knhd->qnhd', p, v).reshape(S, N, E)
        attn = ctx @ stacked["out_w"][l].astype(jnp.float32) + stacked["out_b"][l][0]
        y1 = _layer_norm(y + attn, stacked["ln1_w"][l][0], stacked["ln1_b"][l][0])
        h = jnp.maximum(y1 @ stacked["ff1_w"][l].astype(jnp.float32)
                        + stacked["ff1_b"][l][0], 0.0)
        h2 = h @ stacked["ff2_w"][l].astype(jnp.float32) + stacked["ff2_b"][l][0]
        y = _layer_norm(y1 + h2, stacked["ln2_w"][l][0], stacked["ln2_b"][l][0])
    return y


if __name__ == "__main__":
    # Small shapes consistent with the module's forward semantics.
    seq_len = 8      # S
    batch   = 2      # N
    ninp    = 32     # E (embedding dim)
    nhead   = 4
    nhid    = 64
    nlayers = 2

    key = jax.random.PRNGKey(0)
    k_src, k_params = jax.random.split(key)
    src = jax.random.normal(k_src, (seq_len, batch, ninp), jnp.float32)

    pe = make_positional_encoding(seq_len, ninp)           # wrapper slices pe[:S]
    stacked = init_stacked_params(k_params, nlayers, ninp, nhid)

    # NOTE: dropout layers are identity (eval mode).
    out = te_model_forward(src, pe, stacked, ninp, nhead)
    out = jax.block_until_ready(out)
    assert out.shape == (seq_len, batch, ninp)
    assert bool(jnp.all(jnp.isfinite(out)))

    ref = te_model_reference(src, pe, stacked, ninp, nhead)
    assert bool(jnp.allclose(out, ref, atol=1e-1, rtol=1e-1)), \
        float(jnp.max(jnp.abs(out - ref)))

    print("KERNEL_OK")
</pallas_src>

<mosaic_0001>
module attributes {stable_mosaic.version = 11 : i64} {
  func.func @_te_model_kernel(%arg0: i32, %arg1: memref<16x32xf32, #tpu.memory_space<vmem>>, %arg2: memref<16x32xf32, #tpu.memory_space<vmem>>, %arg3: memref<2x32x96xbf16, #tpu.memory_space<vmem>>, %arg4: memref<2x1x96xf32, #tpu.memory_space<vmem>>, %arg5: memref<2x32x32xbf16, #tpu.memory_space<vmem>>, %arg6: memref<2x1x32xf32, #tpu.memory_space<vmem>>, %arg7: memref<2x1x32xf32, #tpu.memory_space<vmem>>, %arg8: memref<2x1x32xf32, #tpu.memory_space<vmem>>, %arg9: memref<2x32x64xbf16, #tpu.memory_space<vmem>>, %arg10: memref<2x1x64xf32, #tpu.memory_space<vmem>>, %arg11: memref<2x64x32xbf16, #tpu.memory_space<vmem>>, %arg12: memref<2x1x32xf32, #tpu.memory_space<vmem>>, %arg13: memref<2x1x32xf32, #tpu.memory_space<vmem>>, %arg14: memref<2x1x32xf32, #tpu.memory_space<vmem>>, %arg15: memref<16x32xf32, #tpu.memory_space<vmem>>) attributes {dimension_semantics = [#tpu.dimension_semantics<parallel>], iteration_bounds = array<i64: 1>, scalar_prefetch = 0 : i64, scratch_operands = 0 : i64, tpu.core_type = #tpu.core_type<tc>, window_params = [{transform_indices = @transform_0, window_bounds = array<i64: 16, 32>}, {pipeline_mode = #tpu.pipeline_mode<synchronous>, transform_indices = @transform_1, window_bounds = array<i64: 16, 32>}, {pipeline_mode = #tpu.pipeline_mode<synchronous>, transform_indices = @transform_2, window_bounds = array<i64: 2, 32, 96>}, {pipeline_mode = #tpu.pipeline_mode<synchronous>, transform_indices = @transform_3, window_bounds = array<i64: 2, 1, 96>}, {pipeline_mode = #tpu.pipeline_mode<synchronous>, transform_indices = @transform_4, window_bounds = array<i64: 2, 32, 32>}, {pipeline_mode = #tpu.pipeline_mode<synchronous>, transform_indices = @transform_5, window_bounds = array<i64: 2, 1, 32>}, {pipeline_mode = #tpu.pipeline_mode<synchronous>, transform_indices = @transform_6, window_bounds = array<i64: 2, 1, 32>}, {pipeline_mode = #tpu.pipeline_mode<synchronous>, transform_indices = @transform_7, window_bounds = array<i64: 2, 1, 32>}, {pipeline_mode = #tpu.pipeline_mode<synchronous>, transform_indices = @transform_8, window_bounds = array<i64: 2, 32, 64>}, {pipeline_mode = #tpu.pipeline_mode<synchronous>, transform_indices = @transform_9, window_bounds = array<i64: 2, 1, 64>}, {pipeline_mode = #tpu.pipeline_mode<synchronous>, transform_indices = @transform_10, window_bounds = array<i64: 2, 64, 32>}, {pipeline_mode = #tpu.pipeline_mode<synchronous>, transform_indices = @transform_11, window_bounds = array<i64: 2, 1, 32>}, {pipeline_mode = #tpu.pipeline_mode<synchronous>, transform_indices = @transform_12, window_bounds = array<i64: 2, 1, 32>}, {pipeline_mode = #tpu.pipeline_mode<synchronous>, transform_indices = @transform_13, window_bounds = array<i64: 2, 1, 32>}, {transform_indices = @transform_14, window_bounds = array<i64: 16, 32>}]} {
    %c0 = arith.constant 0 : index
    %c0_0 = arith.constant 0 : index
    %0 = vector.load %arg1[%c0, %c0_0] : memref<16x32xf32, #tpu.memory_space<vmem>>, vector<16x32xf32>
    %cst = arith.constant 5.65685415 : f32
    %1 = vector.broadcast %cst : f32 to vector<16x32xf32>
    %2 = arith.mulf %0, %1 : vector<16x32xf32>
    %c0_1 = arith.constant 0 : index
    %c0_2 = arith.constant 0 : index
    %3 = vector.load %arg2[%c0_1, %c0_2] : memref<16x32xf32, #tpu.memory_space<vmem>>, vector<16x32xf32>
    %4 = arith.addf %2, %3 : vector<16x32xf32>
    %5 = tpu.iota {dimensions = array<i32: 0>} : vector<8x8xi32>
    %6 = tpu.iota {dimensions = array<i32: 1>} : vector<8x8xi32>
    %7 = arith.cmpi sle, %6, %5 : vector<8x8xi32>
    %cst_3 = arith.constant 0.000000e+00 : f32
    %cst_4 = arith.constant -1.000000e+30 : f32
    %8 = vector.broadcast %cst_3 : f32 to vector<8x8xf32>
    %9 = vector.broadcast %cst_4 : f32 to vector<8x8xf32>
    %10 = arith.select %7, %8, %9 : vector<8x8xi1>, vector<8x8xf32>
    %c0_i32 = arith.constant 0 : i32
    %c2_i32 = arith.constant 2 : i32
    %11 = arith.addi %c0_i32, %c2_i32 : i32
    %c1_i32 = arith.constant 1 : i32
    %12 = scf.for %arg16 = %c0_i32 to %11 step %c1_i32 iter_args(%arg17 = %4) -> (vector<16x32xf32>)  : i32 {
      %14 = arith.index_cast %arg16 : i32 to index
      %c0_8 = arith.constant 0 : index
      %c0_9 = arith.constant 0 : index
      %15 = vector.load %arg3[%14, %c0_8, %c0_9] : memref<2x32x96xbf16, #tpu.memory_space<vmem>>, vector<1x32x96xbf16>
      %16 = vector.shape_cast %15 : vector<1x32x96xbf16> to vector<32x96xbf16>
      %17 = arith.index_cast %arg16 : i32 to index
      %c0_10 = arith.constant 0 : index
      %c0_11 = arith.constant 0 : index
      %18 = vector.load %arg4[%17, %c0_10, %c0_11] : memref<2x1x96xf32, #tpu.memory_space<vmem>>, vector<1x1x96xf32>
      %19 = vector.shape_cast %18 : vector<1x1x96xf32> to vector<1x96xf32>
      %20 = arith.index_cast %arg16 : i32 to index
      %c0_12 = arith.constant 0 : index
      %c0_13 = arith.constant 0 : index
      %21 = vector.load %arg5[%20, %c0_12, %c0_13] : memref<2x32x32xbf16, #tpu.memory_space<vmem>>, vector<1x32x32xbf16>
      %22 = vector.shape_cast %21 : vector<1x32x32xbf16> to vector<32x32xbf16>
      %23 = arith.index_cast %arg16 : i32 to index
      %c0_14 = arith.constant 0 : index
      %c0_15 = arith.constant 0 : index
      %24 = vector.load %arg6[%23, %c0_14, %c0_15] : memref<2x1x32xf32, #tpu.memory_space<vmem>>, vector<1x1x32xf32>
      %25 = vector.shape_cast %24 : vector<1x1x32xf32> to vector<1x32xf32>
      %26 = arith.index_cast %arg16 : i32 to index
      %c0_16 = arith.constant 0 : index
      %c0_17 = arith.constant 0 : index
      %27 = vector.load %arg7[%26, %c0_16, %c0_17] : memref<2x1x32xf32, #tpu.memory_space<vmem>>, vector<1x1x32xf32>
      %28 = vector.shape_cast %27 : vector<1x1x32xf32> to vector<1x32xf32>
      %29 = arith.index_cast %arg16 : i32 to index
      %c0_18 = arith.constant 0 : index
      %c0_19 = arith.constant 0 : index
      %30 = vector.load %arg8[%29, %c0_18, %c0_19] : memref<2x1x32xf32, #tpu.memory_space<vmem>>, vector<1x1x32xf32>
      %31 = vector.shape_cast %30 : vector<1x1x32xf32> to vector<1x32xf32>
      %32 = arith.index_cast %arg16 : i32 to index
      %c0_20 = arith.constant 0 : index
      %c0_21 = arith.constant 0 : index
      %33 = vector.load %arg9[%32, %c0_20, %c0_21] : memref<2x32x64xbf16, #tpu.memory_space<vmem>>, vector<1x32x64xbf16>
      %34 = vector.shape_cast %33 : vector<1x32x64xbf16> to vector<32x64xbf16>
      %35 = arith.index_cast %arg16 : i32 to index
      %c0_22 = arith.constant 0 : index
      %c0_23 = arith.constant 0 : index
      %36 = vector.load %arg10[%35, %c0_22, %c0_23] : memref<2x1x64xf32, #tpu.memory_space<vmem>>, vector<1x1x64xf32>
      %37 = vector.shape_cast %36 : vector<1x1x64xf32> to vector<1x64xf32>
      %38 = arith.index_cast %arg16 : i32 to index
      %c0_24 = arith.constant 0 : index
      %c0_25 = arith.constant 0 : index
      %39 = vector.load %arg11[%38, %c0_24, %c0_25] : memref<2x64x32xbf16, #tpu.memory_space<vmem>>, vector<1x64x32xbf16>
      %40 = vector.shape_cast %39 : vector<1x64x32xbf16> to vector<64x32xbf16>
      %41 = arith.index_cast %arg16 : i32 to index
      %c0_26 = arith.constant 0 : index
      %c0_27 = arith.constant 0 : index
      %42 = vector.load %arg12[%41, %c0_26, %c0_27] : memref<2x1x32xf32, #tpu.memory_space<vmem>>, vector<1x1x32xf32>
      %43 = vector.shape_cast %42 : vector<1x1x32xf32> to vector<1x32xf32>
      %44 = arith.index_cast %arg16 : i32 to index
      %c0_28 = arith.constant 0 : index
      %c0_29 = arith.constant 0 : index
      %45 = vector.load %arg13[%44, %c0_28, %c0_29] : memref<2x1x32xf32, #tpu.memory_space<vmem>>, vector<1x1x32xf32>
      %46 = vector.shape_cast %45 : vector<1x1x32xf32> to vector<1x32xf32>
      %47 = arith.index_cast %arg16 : i32 to index
      %c0_30 = arith.constant 0 : index
      %c0_31 = arith.constant 0 : index
      %48 = vector.load %arg14[%47, %c0_30, %c0_31] : memref<2x1x32xf32, #tpu.memory_space<vmem>>, vector<1x1x32xf32>
      %49 = vector.shape_cast %48 : vector<1x1x32xf32> to vector<1x32xf32>
      %50 = arith.truncf %arg17 : vector<16x32xf32> to vector<16x32xbf16>
      %cst_32 = arith.constant dense<0.000000e+00> : vector<16x96xf32>
      %51 = tpu.matmul %50, %16, %cst_32 {dimension_numbers = #tpu.dot_dimension_numbers<[1], [0], [0], [1], [0, 0, 1, 1], [], []>} : vector<16x32xbf16>, vector<32x96xbf16>, vector<16x96xf32> -> vector<16x96xf32>
      %52 = vector.broadcast %19 : vector<1x96xf32> to vector<16x96xf32>
      %53 = arith.addf %51, %52 : vector<16x96xf32>
      %54 = vector.extract_strided_slice %53 {offsets = [0, 0], sizes = [16, 32], strides = [1, 1]} : vector<16x96xf32> to vector<16x32xf32>
      %55 = vector.extract_strided_slice %53 {offsets = [0, 32], sizes = [16, 32], strides = [1, 1]} : vector<16x96xf32> to vector<16x32xf32>
      %56 = vector.extract_strided_slice %53 {offsets = [0, 64], sizes = [16, 32], strides = [1, 1]} : vector<16x96xf32> to vector<16x32xf32>
      %57 = vector.extract_strided_slice %54 {offsets = [0, 0], sizes = [8, 8], strides = [1, 1]} : vector<16x32xf32> to vector<8x8xf32>
      %58 = vector.extract_strided_slice %54 {offsets = [0, 8], sizes = [8, 8], strides = [1, 1]} : vector<16x32xf32> to vector<8x8xf32>
      %59 = vector.extract_strided_slice %54 {offsets = [0, 16], sizes = [8, 8], strides = [1, 1]} : vector<16x32xf32> to vector<8x8xf32>
      %60 = vector.extract_strided_slice %54 {offsets = [0, 24], sizes = [8, 8], strides = [1, 1]} : vector<16x32xf32> to vector<8x8xf32>
      %61 = vector.extract_strided_slice %54 {offsets = [8, 0], sizes = [8, 8], strides = [1, 1]} : vector<16x32xf32> to vector<8x8xf32>
      %62 = vector.extract_strided_slice %54 {offsets = [8, 8], sizes = [8, 8], strides = [1, 1]} : vector<16x32xf32> to vector<8x8xf32>
      %63 = vector.extract_strided_slice %54 {offsets = [8, 16], sizes = [8, 8], strides = [1, 1]} : vector<16x32xf32> to vector<8x8xf32>
      %64 = vector.extract_strided_slice %54 {offsets = [8, 24], sizes = [8, 8], strides = [1, 1]} : vector<16x32xf32> to vector<8x8xf32>
      %65 = vector.shape_cast %57 : vector<8x8xf32> to vector<1x8x8xf32>
      %66 = vector.shape_cast %58 : vector<8x8xf32> to vector<1x8x8xf32>
      %67 = vector.shape_cast %59 : vector<8x8xf32> to vector<1x8x8xf32>
      %68 = vector.shape_cast %60 : vector<8x8xf32> to vector<1x8x8xf32>
      %69 = vector.shape_cast %61 : vector<8x8xf32> to vector<1x8x8xf32>
      %70 = vector.shape_cast %62 : vector<8x8xf32> to vector<1x8x8xf32>
      %71 = vector.shape_cast %63 : vector<8x8xf32> to vector<1x8x8xf32>
      %72 = vector.shape_cast %64 : vector<8x8xf32> to vector<1x8x8xf32>
      %73 = tpu.concatenate %65, %66, %67, %68, %69, %70, %71, %72 in 0 : vector<1x8x8xf32>, vector<1x8x8xf32>, vector<1x8x8xf32>, vector<1x8x8xf32>, vector<1x8x8xf32>, vector<1x8x8xf32>, vector<1x8x8xf32>, vector<1x8x8xf32> -> vector<8x8x8xf32>
      %74 = arith.truncf %73 : vector<8x8x8xf32> to vector<8x8x8xbf16>
      %75 = vector.extract_strided_slice %55 {offsets = [0, 0], sizes = [8, 8], strides = [1, 1]} : vector<16x32xf32> to vector<8x8xf32>
      %76 = vector.extract_strided_slice %55 {offsets = [0, 8], sizes = [8, 8], strides = [1, 1]} : vector<16x32xf32> to vector<8x8xf32>
      %77 = vector.extract_strided_slice %55 {offsets = [0, 16], sizes = [8, 8], strides = [1, 1]} : vector<16x32xf32> to vector<8x8xf32>
      %78 = vector.extract_strided_slice %55 {offsets = [0, 24], sizes = [8, 8], strides = [1, 1]} : vector<16x32xf32> to vector<8x8xf32>
      %79 = vector.extract_strided_slice %55 {offsets = [8, 0], sizes = [8, 8], strides = [1, 1]} : vector<16x32xf32> to vector<8x8xf32>
      %80 = vector.extract_strided_slice %55 {offsets = [8, 8], sizes = [8, 8], strides = [1, 1]} : vector<16x32xf32> to vector<8x8xf32>
      %81 = vector.extract_strided_slice %55 {offsets = [8, 16], sizes = [8, 8], strides = [1, 1]} : vector<16x32xf32> to vector<8x8xf32>
      %82 = vector.extract_strided_slice %55 {offsets = [8, 24], sizes = [8, 8], strides = [1, 1]} : vector<16x32xf32> to vector<8x8xf32>
      %83 = vector.shape_cast %75 : vector<8x8xf32> to vector<1x8x8xf32>
      %84 = vector.shape_cast %76 : vector<8x8xf32> to vector<1x8x8xf32>
      %85 = vector.shape_cast %77 : vector<8x8xf32> to vector<1x8x8xf32>
      %86 = vector.shape_cast %78 : vector<8x8xf32> to vector<1x8x8xf32>
      %87 = vector.shape_cast %79 : vector<8x8xf32> to vector<1x8x8xf32>
      %88 = vector.shape_cast %80 : vector<8x8xf32> to vector<1x8x8xf32>
      %89 = vector.shape_cast %81 : vector<8x8xf32> to vector<1x8x8xf32>
      %90 = vector.shape_cast %82 : vector<8x8xf32> to vector<1x8x8xf32>
      %91 = tpu.concatenate %83, %84, %85, %86, %87, %88, %89, %90 in 0 : vector<1x8x8xf32>, vector<1x8x8xf32>, vector<1x8x8xf32>, vector<1x8x8xf32>, vector<1x8x8xf32>, vector<1x8x8xf32>, vector<1x8x8xf32>, vector<1x8x8xf32> -> vector<8x8x8xf32>
      %92 = arith.truncf %91 : vector<8x8x8xf32> to vector<8x8x8xbf16>
      %93 = vector.extract_strided_slice %56 {offsets = [0, 0], sizes = [8, 8], strides = [1, 1]} : vector<16x32xf32> to vector<8x8xf32>
      %94 = vector.extract_strided_slice %56 {offsets = [0, 8], sizes = [8, 8], strides = [1, 1]} : vector<16x32xf32> to vector<8x8xf32>
      %95 = vector.extract_strided_slice %56 {offsets = [0, 16], sizes = [8, 8], strides = [1, 1]} : vector<16x32xf32> to vector<8x8xf32>
      %96 = vector.extract_strided_slice %56 {offsets = [0, 24], sizes = [8, 8], strides = [1, 1]} : vector<16x32xf32> to vector<8x8xf32>
      %97 = vector.extract_strided_slice %56 {offsets = [8, 0], sizes = [8, 8], strides = [1, 1]} : vector<16x32xf32> to vector<8x8xf32>
      %98 = vector.extract_strided_slice %56 {offsets = [8, 8], sizes = [8, 8], strides = [1, 1]} : vector<16x32xf32> to vector<8x8xf32>
      %99 = vector.extract_strided_slice %56 {offsets = [8, 16], sizes = [8, 8], strides = [1, 1]} : vector<16x32xf32> to vector<8x8xf32>
      %100 = vector.extract_strided_slice %56 {offsets = [8, 24], sizes = [8, 8], strides = [1, 1]} : vector<16x32xf32> to vector<8x8xf32>
      %101 = vector.shape_cast %93 : vector<8x8xf32> to vector<1x8x8xf32>
      %102 = vector.shape_cast %94 : vector<8x8xf32> to vector<1x8x8xf32>
      %103 = vector.shape_cast %95 : vector<8x8xf32> to vector<1x8x8xf32>
      %104 = vector.shape_cast %96 : vector<8x8xf32> to vector<1x8x8xf32>
      %105 = vector.shape_cast %97 : vector<8x8xf32> to vector<1x8x8xf32>
      %106 = vector.shape_cast %98 : vector<8x8xf32> to vector<1x8x8xf32>
      %107 = vector.shape_cast %99 : vector<8x8xf32> to vector<1x8x8xf32>
      %108 = vector.shape_cast %100 : vector<8x8xf32> to vector<1x8x8xf32>
      %109 = tpu.concatenate %101, %102, %103, %104, %105, %106, %107, %108 in 0 : vector<1x8x8xf32>, vector<1x8x8xf32>, vector<1x8x8xf32>, vector<1x8x8xf32>, vector<1x8x8xf32>, vector<1x8x8xf32>, vector<1x8x8xf32>, vector<1x8x8xf32> -> vector<8x8x8xf32>
      %110 = arith.truncf %109 : vector<8x8x8xf32> to vector<8x8x8xbf16>
      "tpu.trace_start"() <{level = 10 : i32, message = "gqd,gkd->gqk"}> : () -> ()
      %cst_33 = arith.constant dense<0.000000e+00> : vector<8x8x8xf32>
      %111 = tpu.matmul %74, %92, %cst_33 {dimension_numbers = #tpu.dot_dimension_numbers<[2], [2], [1], [1], [0, 0, 0, 1, 1, 1], [0], [0]>} : vector<8x8x8xbf16>, vector<8x8x8xbf16>, vector<8x8x8xf32> -> vector<8x8x8xf32>
      "tpu.trace_stop"() : () -> ()
      %cst_34 = arith.constant 0.353553385 : f32
      %112 = vector.broadcast %cst_34 : f32 to vector<8x8x8xf32>
      %113 = arith.mulf %111, %112 : vector<8x8x8xf32>
      %114 = vector.shape_cast %10 : vector<8x8xf32> to vector<1x8x8xf32>
      %115 = vector.broadcast %114 : vector<1x8x8xf32> to vector<8x8x8xf32>
      %116 = arith.addf %113, %115 : vector<8x8x8xf32>
      %cst_35 = arith.constant dense<0xFF800000> : vector<8x8xf32>
      %117 = vector.multi_reduction <maximumf>, %116, %cst_35 [2] : vector<8x8x8xf32> to vector<8x8xf32>
      %118 = vector.shape_cast %117 : vector<8x8xf32> to vector<8x8x1xf32>
      %119 = vector.broadcast %118 : vector<8x8x1xf32> to vector<8x8x8xf32>
      %120 = arith.subf %116, %119 : vector<8x8x8xf32>
      %121 = math.exp %120 : vector<8x8x8xf32>
      %cst_36 = arith.constant dense<0.000000e+00> : vector<8x8xf32>
      %122 = vector.multi_reduction <add>, %121, %cst_36 [2] : vector<8x8x8xf32> to vector<8x8xf32>
      %123 = vector.shape_cast %122 : vector<8x8xf32> to vector<8x8x1xf32>
      %124 = tpu.reciprocal %123 {approx = true} : vector<8x8x1xf32> -> vector<8x8x1xf32>
      %125 = vector.broadcast %124 : vector<8x8x1xf32> to vector<8x8x8xf32>
      %126 = arith.mulf %121, %125 : vector<8x8x8xf32>
      %127 = arith.truncf %126 : vector<8x8x8xf32> to vector<8x8x8xbf16>
      "tpu.trace_start"() <{level = 10 : i32, message = "gqk,gkd->gqd"}> : () -> ()
      %cst_37 = arith.constant dense<0.000000e+00> : vector<8x8x8xf32>
      %128 = tpu.matmul %127, %110, %cst_37 {dimension_numbers = #tpu.dot_dimension_numbers<[2], [1], [1], [2], [0, 0, 0, 1, 1, 2], [0], [0]>} : vector<8x8x8xbf16>, vector<8x8x8xbf16>, vector<8x8x8xf32> -> vector<8x8x8xf32>
      "tpu.trace_stop"() : () -> ()
      %129 = vector.extract_strided_slice %128 {offsets = [0, 0, 0], sizes = [1, 8, 8], strides = [1, 1, 1]} : vector<8x8x8xf32> to vector<1x8x8xf32>
      %130 = vector.shape_cast %129 : vector<1x8x8xf32> to vector<8x8xf32>
      %131 = vector.extract_strided_slice %128 {offsets = [1, 0, 0], sizes = [1, 8, 8], strides = [1, 1, 1]} : vector<8x8x8xf32> to vector<1x8x8xf32>
      %132 = vector.shape_cast %131 : vector<1x8x8xf32> to vector<8x8xf32>
      %133 = vector.extract_strided_slice %128 {offsets = [2, 0, 0], sizes = [1, 8, 8], strides = [1, 1, 1]} : vector<8x8x8xf32> to vector<1x8x8xf32>
      %134 = vector.shape_cast %133 : vector<1x8x8xf32> to vector<8x8xf32>
      %135 = vector.extract_strided_slice %128 {offsets = [3, 0, 0], sizes = [1, 8, 8], strides = [1, 1, 1]} : vector<8x8x8xf32> to vector<1x8x8xf32>
      %136 = vector.shape_cast %135 : vector<1x8x8xf32> to vector<8x8xf32>
      %137 = tpu.concatenate %130, %132, %134, %136 in 1 : vector<8x8xf32>, vector<8x8xf32>, vector<8x8xf32>, vector<8x8xf32> -> vector<8x32xf32>
      %138 = vector.extract_strided_slice %128 {offsets = [4, 0, 0], sizes = [1, 8, 8], strides = [1, 1, 1]} : vector<8x8x8xf32> to vector<1x8x8xf32>
      %139 = vector.shape_cast %138 : vector<1x8x8xf32> to vector<8x8xf32>
      %140 = vector.extract_strided_slice %128 {offsets = [5, 0, 0], sizes = [1, 8, 8], strides = [1, 1, 1]} : vector<8x8x8xf32> to vector<1x8x8xf32>
      %141 = vector.shape_cast %140 : vector<1x8x8xf32> to vector<8x8xf32>
      %142 = vector.extract_strided_slice %128 {offsets = [6, 0, 0], sizes = [1, 8, 8], strides = [1, 1, 1]} : vector<8x8x8xf32> to vector<1x8x8xf32>
      %143 = vector.shape_cast %142 : vector<1x8x8xf32> to vector<8x8xf32>
      %144 = vector.extract_strided_slice %128 {offsets = [7, 0, 0], sizes = [1, 8, 8], strides = [1, 1, 1]} : vector<8x8x8xf32> to vector<1x8x8xf32>
      %145 = vector.shape_cast %144 : vector<1x8x8xf32> to vector<8x8xf32>
      %146 = tpu.concatenate %139, %141, %143, %145 in 1 : vector<8x8xf32>, vector<8x8xf32>, vector<8x8xf32>, vector<8x8xf32> -> vector<8x32xf32>
      %147 = tpu.concatenate %137, %146 in 0 : vector<8x32xf32>, vector<8x32xf32> -> vector<16x32xf32>
      %148 = arith.truncf %147 : vector<16x32xf32> to vector<16x32xbf16>
      %cst_38 = arith.constant dense<0.000000e+00> : vector<16x32xf32>
      %149 = tpu.matmul %148, %22, %cst_38 {dimension_numbers = #tpu.dot_dimension_numbers<[1], [0], [0], [1], [0, 0, 1, 1], [], []>} : vector<16x32xbf16>, vector<32x32xbf16>, vector<16x32xf32> -> vector<16x32xf32>
      %150 = vector.broadcast %25 : vector<1x32xf32> to vector<16x32xf32>
      %151 = arith.addf %149, %150 : vector<16x32xf32>
      %152 = arith.addf %arg17, %151 : vector<16x32xf32>
      %cst_39 = arith.constant dense<0.000000e+00> : vector<16xf32>
      %153 = vector.multi_reduction <add>, %152, %cst_39 [1] : vector<16x32xf32> to vector<16xf32>
      %154 = vector.shape_cast %153 : vector<16xf32> to vector<16x1xf32>
      %cst_40 = arith.constant 3.200000e+01 : f32
      %155 = vector.broadcast %cst_40 : f32 to vector<16x1xf32>
      %156 = arith.divf %154, %155 : vector<16x1xf32>
      %157 = vector.broadcast %156 : vector<16x1xf32> to vector<16x32xf32>
      %158 = arith.subf %152, %157 : vector<16x32xf32>
      %159 = arith.mulf %158, %158 : vector<16x32xf32>
      %cst_41 = arith.constant dense<0.000000e+00> : vector<16xf32>
      %160 = vector.multi_reduction <add>, %159, %cst_41 [1] : vector<16x32xf32> to vector<16xf32>
      %161 = vector.shape_cast %160 : vector<16xf32> to vector<16x1xf32>
      %cst_42 = arith.constant 3.200000e+01 : f32
      %162 = vector.broadcast %cst_42 : f32 to vector<16x1xf32>
      %163 = arith.divf %161, %162 : vector<16x1xf32>
      %164 = vector.broadcast %156 : vector<16x1xf32> to vector<16x32xf32>
      %165 = arith.subf %152, %164 : vector<16x32xf32>
      %cst_43 = arith.constant 9.99999974E-6 : f32
      %166 = vector.broadcast %cst_43 : f32 to vector<16x1xf32>
      %167 = arith.addf %163, %166 : vector<16x1xf32>
      %168 = math.rsqrt %167 : vector<16x1xf32>
      %169 = vector.broadcast %168 : vector<16x1xf32> to vector<16x32xf32>
      %170 = arith.mulf %165, %169 : vector<16x32xf32>
      %171 = vector.broadcast %28 : vector<1x32xf32> to vector<16x32xf32>
      %172 = arith.mulf %170, %171 : vector<16x32xf32>
      %173 = vector.broadcast %31 : vector<1x32xf32> to vector<16x32xf32>
      %174 = arith.addf %172, %173 : vector<16x32xf32>
      %175 = arith.truncf %174 : vector<16x32xf32> to vector<16x32xbf16>
      %cst_44 = arith.constant dense<0.000000e+00> : vector<16x64xf32>
      %176 = tpu.matmul %175, %34, %cst_44 {dimension_numbers = #tpu.dot_dimension_numbers<[1], [0], [0], [1], [0, 0, 1, 1], [], []>} : vector<16x32xbf16>, vector<32x64xbf16>, vector<16x64xf32> -> vector<16x64xf32>
      %177 = vector.broadcast %37 : vector<1x64xf32> to vector<16x64xf32>
      %178 = arith.addf %176, %177 : vector<16x64xf32>
      %cst_45 = arith.constant 0.000000e+00 : f32
      %179 = vector.broadcast %cst_45 : f32 to vector<16x64xf32>
      %180 = arith.maximumf %178, %179 : vector<16x64xf32>
      %181 = arith.truncf %180 : vector<16x64xf32> to vector<16x64xbf16>
      %cst_46 = arith.constant dense<0.000000e+00> : vector<16x32xf32>
      %182 = tpu.matmul %181, %40, %cst_46 {dimension_numbers = #tpu.dot_dimension_numbers<[1], [0], [0], [1], [0, 0, 1, 1], [], []>} : vector<16x64xbf16>, vector<64x32xbf16>, vector<16x32xf32> -> vector<16x32xf32>
      %183 = vector.broadcast %43 : vector<1x32xf32> to vector<16x32xf32>
      %184 = arith.addf %182, %183 : vector<16x32xf32>
      %185 = arith.addf %174, %184 : vector<16x32xf32>
      %cst_47 = arith.constant dense<0.000000e+00> : vector<16xf32>
      %186 = vector.multi_reduction <add>, %185, %cst_47 [1] : vector<16x32xf32> to vector<16xf32>
      %187 = vector.shape_cast %186 : vector<16xf32> to vector<16x1xf32>
      %cst_48 = arith.constant 3.200000e+01 : f32
      %188 = vector.broadcast %cst_48 : f32 to vector<16x1xf32>
      %189 = arith.divf %187, %188 : vector<16x1xf32>
      %190 = vector.broadcast %189 : vector<16x1xf32> to vector<16x32xf32>
      %191 = arith.subf %185, %190 : vector<16x32xf32>
      %192 = arith.mulf %191, %191 : vector<16x32xf32>
      %cst_49 = arith.constant dense<0.000000e+00> : vector<16xf32>
      %193 = vector.multi_reduction <add>, %192, %cst_49 [1] : vector<16x32xf32> to vector<16xf32>
      %194 = vector.shape_cast %193 : vector<16xf32> to vector<16x1xf32>
      %cst_50 = arith.constant 3.200000e+01 : f32
      %195 = vector.broadcast %cst_50 : f32 to vector<16x1xf32>
      %196 = arith.divf %194, %195 : vector<16x1xf32>
      %197 = vector.broadcast %189 : vector<16x1xf32> to vector<16x32xf32>
      %198 = arith.subf %185, %197 : vector<16x32xf32>
      %cst_51 = arith.constant 9.99999974E-6 : f32
      %199 = vector.broadcast %cst_51 : f32 to vector<16x1xf32>
      %200 = arith.addf %196, %199 : vector<16x1xf32>
      %201 = math.rsqrt %200 : vector<16x1xf32>
      %202 = vector.broadcast %201 : vector<16x1xf32> to vector<16x32xf32>
      %203 = arith.mulf %198, %202 : vector<16x32xf32>
      %204 = vector.broadcast %46 : vector<1x32xf32> to vector<16x32xf32>
      %205 = arith.mulf %203, %204 : vector<16x32xf32>
      %206 = vector.broadcast %49 : vector<1x32xf32> to vector<16x32xf32>
      %207 = arith.addf %205, %206 : vector<16x32xf32>
      scf.yield %207 : vector<16x32xf32>
    }
    %c2_i32_5 = arith.constant 2 : i32
    %c0_6 = arith.constant 0 : index
    %c0_7 = arith.constant 0 : index
    %13 = vector.load %arg15[%c0_6, %c0_7] : memref<16x32xf32, #tpu.memory_space<vmem>>, vector<16x32xf32>
    tpu.vector_store %arg15[%c0_6, %c0_7], %12 {strides = array<i32>} : memref<16x32xf32, #tpu.memory_space<vmem>>, vector<16x32xf32>,
    return
  }
  func.func @transform_0(%arg0: i32) -> (i32, i32) {
    %c0_i32 = arith.constant 0 : i32
    %c0_i32_0 = arith.constant 0 : i32
    return %arg0, %c0_i32 : i32, i32
  }
  func.func @transform_1(%arg0: i32) -> (i32, i32) {
    %c0_i32 = arith.constant 0 : i32
    %c0_i32_0 = arith.constant 0 : i32
    %c0_i32_1 = arith.constant 0 : i32
    return %c0_i32, %c0_i32_0 : i32, i32
  }
  func.func @transform_2(%arg0: i32) -> (i32, i32, i32) {
    %c0_i32 = arith.constant 0 : i32
    %c0_i32_0 = arith.constant 0 : i32
    %c0_i32_1 = arith.constant 0 : i32
    %c0_i32_2 = arith.constant 0 : i32
    return %c0_i32, %c0_i32_0, %c0_i32_1 : i32, i32, i32
  }
  func.func @transform_3(%arg0: i32) -> (i32, i32, i32) {
    %c0_i32 = arith.constant 0 : i32
    %c0_i32_0 = arith.constant 0 : i32
    %c0_i32_1 = arith.constant 0 : i32
    %c0_i32_2 = arith.constant 0 : i32
    return %c0_i32, %c0_i32_0, %c0_i32_1 : i32, i32, i32
  }
  func.func @transform_4(%arg0: i32) -> (i32, i32, i32) {
    %c0_i32 = arith.constant 0 : i32
    %c0_i32_0 = arith.constant 0 : i32
    %c0_i32_1 = arith.constant 0 : i32
    %c0_i32_2 = arith.constant 0 : i32
    return %c0_i32, %c0_i32_0, %c0_i32_1 : i32, i32, i32
  }
  func.func @transform_5(%arg0: i32) -> (i32, i32, i32) {
    %c0_i32 = arith.constant 0 : i32
    %c0_i32_0 = arith.constant 0 : i32
    %c0_i32_1 = arith.constant 0 : i32
    %c0_i32_2 = arith.constant 0 : i32
    return %c0_i32, %c0_i32_0, %c0_i32_1 : i32, i32, i32
  }
  func.func @transform_6(%arg0: i32) -> (i32, i32, i32) {
    %c0_i32 = arith.constant 0 : i32
    %c0_i32_0 = arith.constant 0 : i32
    %c0_i32_1 = arith.constant 0 : i32
    %c0_i32_2 = arith.constant 0 : i32
    return %c0_i32, %c0_i32_0, %c0_i32_1 : i32, i32, i32
  }
  func.func @transform_7(%arg0: i32) -> (i32, i32, i32) {
    %c0_i32 = arith.constant 0 : i32
    %c0_i32_0 = arith.constant 0 : i32
    %c0_i32_1 = arith.constant 0 : i32
    %c0_i32_2 = arith.constant 0 : i32
    return %c0_i32, %c0_i32_0, %c0_i32_1 : i32, i32, i32
  }
  func.func @transform_8(%arg0: i32) -> (i32, i32, i32) {
    %c0_i32 = arith.constant 0 : i32
    %c0_i32_0 = arith.constant 0 : i32
    %c0_i32_1 = arith.constant 0 : i32
    %c0_i32_2 = arith.constant 0 : i32
    return %c0_i32, %c0_i32_0, %c0_i32_1 : i32, i32, i32
  }
  func.func @transform_9(%arg0: i32) -> (i32, i32, i32) {
    %c0_i32 = arith.constant 0 : i32
    %c0_i32_0 = arith.constant 0 : i32
    %c0_i32_1 = arith.constant 0 : i32
    %c0_i32_2 = arith.constant 0 : i32
    return %c0_i32, %c0_i32_0, %c0_i32_1 : i32, i32, i32
  }
  func.func @transform_10(%arg0: i32) -> (i32, i32, i32) {
    %c0_i32 = arith.constant 0 : i32
    %c0_i32_0 = arith.constant 0 : i32
    %c0_i32_1 = arith.constant 0 : i32
    %c0_i32_2 = arith.constant 0 : i32
    return %c0_i32, %c0_i32_0, %c0_i32_1 : i32, i32, i32
  }
  func.func @transform_11(%arg0: i32) -> (i32, i32, i32) {
    %c0_i32 = arith.constant 0 : i32
    %c0_i32_0 = arith.constant 0 : i32
    %c0_i32_1 = arith.constant 0 : i32
    %c0_i32_2 = arith.constant 0 : i32
    return %c0_i32, %c0_i32_0, %c0_i32_1 : i32, i32, i32
  }
  func.func @transform_12(%arg0: i32) -> (i32, i32, i32) {
    %c0_i32 = arith.constant 0 : i32
    %c0_i32_0 = arith.constant 0 : i32
    %c0_i32_1 = arith.constant 0 : i32
    %c0_i32_2 = arith.constant 0 : i32
    return %c0_i32, %c0_i32_0, %c0_i32_1 : i32, i32, i32
  }
  func.func @transform_13(%arg0: i32) -> (i32, i32, i32) {
    %c0_i32 = arith.constant 0 : i32
    %c0_i32_0 = arith.constant 0 : i32
    %c0_i32_1 = arith.constant 0 : i32
    %c0_i32_2 = arith.constant 0 : i32
    return %c0_i32, %c0_i32_0, %c0_i32_1 : i32, i32, i32
  }
  func.func @transform_14(%arg0: i32) -> (i32, i32) {
    %c0_i32 = arith.constant 0 : i32
    %c0_i32_0 = arith.constant 0 : i32
    return %arg0, %c0_i32 : i32, i32
  }
}

</mosaic_0001>

<bundles_post_ra>
// kernel: tpu_custom_call.1
= control target key start
LH: loop header
LB: loop body
LE: loop exit
PB: predicated region body
PF: predicated region fallthrough
CT: control target
= control target key end

     0   :  { %19 = vsyncpa [#allocation3], 0  ;;  %s2534_s0 = inlined_call_operand.hbm [shape: f32[16,32], index: 0, kind: input, shape index: {}]   ;;  %s2535_s1 = inlined_call_operand.hbm [shape: f32[16,32], index: 1, kind: input, shape index: {}]   ;;  %s2536_s2 = inlined_call_operand.vmem [shape: bf16[2,32,96], index: 2, kind: input, shape index: {}]   ;;  %s2537_s3 = inlined_call_operand.vmem [shape: f32[2,1,96], index: 3, kind: input, shape index: {}]   ;;  %s2538_s4 = inlined_call_operand.vmem [shape: bf16[2,32,32], index: 4, kind: input, shape index: {}]   ;;  %s2539_s5 = inlined_call_operand.vmem [shape: f32[2,1,32], index: 5, kind: input, shape index: {}]   ;;  %s2540_s6 = inlined_call_operand.hbm [shape: f32[2,1,32], index: 6, kind: input, shape index: {}]   ;;  %s2541_s7 = inlined_call_operand.hbm [shape: f32[2,1,32], index: 7, kind: input, shape index: {}]   ;;  %s2542_s8 = inlined_call_operand.vmem [shape: bf16[2,32,64], index: 8, kind: input, shape index: {}]   ;;  %s2543_s9 = inlined_call_operand.hbm [shape: f32[2,1,64], index: 9, kind: input, shape index: {}]   ;;  %s2544_s10 = inlined_call_operand.vmem [shape: bf16[2,64,32], index: 10, kind: input, shape index: {}]   ;;  %s2545_s11 = inlined_call_operand.vmem [shape: f32[2,1,32], index: 11, kind: input, shape index: {}]   ;;  %s2546_s12 = inlined_call_operand.vmem [shape: f32[2,1,32], index: 12, kind: input, shape index: {}]   ;;  %s2547_s13 = inlined_call_operand.vmem [shape: f32[2,1,32], index: 13, kind: input, shape index: {}]   ;;  %s2548_s14 = inlined_call_operand.hbm [shape: f32[16,32], index: 14, kind: output, shape index: {}]  }
   0x1   :  { %20 = vsyncpa [#allocation6], 0 }
   0x2   :  { %21 = vsyncpa [#allocation9], 0 }
   0x3   :  { %22 = vsyncpa [#allocation4], 0  ;;  %s2041_s29 = smov [#allocation5]   ;;  %s1877_s17 = scalar_lea.hbm %s2535_s1, 256 }
   0x4   :  { %s40_s30 = sshll.u32 %s2041_s29, 4  ;;  %p1878_p0 = scmp.ne.s32.totalorder %s2535_s1, %s1877_s17  ;;  %s41_s30 = int_to_ptr.vmem [resolvable:$true] %s40_s30 }
   0x5   :  { %p1881_p1 = scmp.lt.u32.totalorder %s1877_s17, %s2535_s1 }
   0x7   :  { %p1883_p2 = pnand %p1881_p1, %p1878_p0 }
   0x9   :  { %1886 = shalt.err (!%p1883_p2)
}
   0xa   :  { %s1887_s22 = scalar_lea.vmem %s41_s30, 256  ;;  %p1892_p4 = scmp.lt.s32.totalorder %s41_s30, %s41_s30 }
   0xb   :  { %p1888_p3 = scmp.ne.s32.totalorder %s41_s30, %s1887_s22  ;;  %p1893_p5 = scmp.lt.s32.totalorder %s1887_s22, %s1887_s22 }
   0xd   :  { %p1894_p6 = por %p1893_p5, %p1892_p4 }
   0xf   :  { %p1895_p7 = pnand %p1894_p6, %p1888_p3 }
  0x11   :  { %1898 = shalt.err (!%p1895_p7)
}
  0x12   :  { %s2042_s23 = smov 128   ;;  %s2043_s24 = smov 8  }
  0x13   :  { %46 = dma.hbm_to_vmem [thread:$0]  %s2535_s1, 256, %s41_s30, [#allocation6], %s2042_s23, %s2042_s23, %s2043_s24  }
  0x14   :  { %s2044_s27 = smov [#allocation8]   ;;  %s2045_s29 = smov [#allocation2]  }
  0x15   :  { %s72_s28 = sshll.u32 %s2044_s27, 4  ;;  %s28_s15 = sshll.u32 %s2045_s29, 4  ;;  %s73_s28 = int_to_ptr.vmem [resolvable:$true] %s72_s28  ;;  %s29_s15 = int_to_ptr.vmem [resolvable:$true] %s28_s15 }
  0x16   :  { %s1899_s18 = scalar_lea.hbm %s2541_s7, 32 }
  0x17   :  { %p1900_p8 = scmp.ne.s32.totalorder %s2541_s7, %s1899_s18  ;;  %p1903_p9 = scmp.lt.u32.totalorder %s1899_s18, %s2541_s7 }
  0x19   :  { %p1905_p10 = pnand %p1903_p9, %p1900_p8 }
  0x1b   :  { %1908 = shalt.err (!%p1905_p10)
}
  0x1c   :  { %s1909_s1 = scalar_lea.vmem %s73_s28, 32  ;;  %p1914_p12 = scmp.lt.s32.totalorder %s73_s28, %s73_s28 }
  0x1d   :  { %p1910_p11 = scmp.ne.s32.totalorder %s73_s28, %s1909_s1  ;;  %p1915_p13 = scmp.lt.s32.totalorder %s1909_s1, %s1909_s1 }
  0x1f   :  { %p1916_p0 = por %p1915_p13, %p1914_p12 }
  0x21   :  { %p1917_p1 = pnand %p1916_p0, %p1910_p11 }
  0x23   :  { %1920 = shalt.err (!%p1917_p1)
}
  0x24   :  { %s2046_s30 = smov 16   ;;  %s2047_s25 = smov 1  }
  0x25   :  { %78 = dma.hbm_to_vmem [thread:$0]  %s2541_s7, 32, %s73_s28, [#allocation9], %s2046_s30, %s2046_s30, %s2047_s25  }
  0x26   :  { %s1921_s17 = scalar_lea.hbm %s2534_s0, 256 }
  0x27   :  { %p1922_p2 = scmp.ne.s32.totalorder %s2534_s0, %s1921_s17  ;;  %p1925_p3 = scmp.lt.u32.totalorder %s1921_s17, %s2534_s0 }
  0x29   :  { %p1927_p4 = pnand %p1925_p3, %p1922_p2 }
  0x2b   :  { %1930 = shalt.err (!%p1927_p4)
}
  0x2c   :  { %s1931_s22 = scalar_lea.vmem %s29_s15, 256  ;;  %p1936_p6 = scmp.lt.s32.totalorder %s29_s15, %s29_s15 }
  0x2d   :  { %p1932_p5 = scmp.ne.s32.totalorder %s29_s15, %s1931_s22  ;;  %p1937_p7 = scmp.lt.s32.totalorder %s1931_s22, %s1931_s22 }
  0x2f   :  { %p1938_p8 = por %p1937_p7, %p1936_p6 }
  0x31   :  { %p1939_p9 = pnand %p1938_p8, %p1932_p5 }
  0x33   :  { %1942 = shalt.err (!%p1939_p9)
}
  0x34   :  { %34 = dma.hbm_to_vmem [thread:$0]  %s2534_s0, 256, %s29_s15, [#allocation3], %s2042_s23, %s2042_s23, %s2043_s24  }
  0x35   :  { %s2048_s1 = smov [#allocation7]   ;;  %s2049_s27 = smov [#allocation10]  }
  0x36   :  { %s60_s26 = sshll.u32 %s2048_s1, 4  ;;  %s86_s29 = sshll.u32 %s2049_s27, 4  ;;  %s61_s26 = int_to_ptr.vmem [resolvable:$true] %s60_s26  ;;  %s87_s29 = int_to_ptr.vmem [resolvable:$true] %s86_s29 }
  0x37   :  { %s1943_s18 = scalar_lea.hbm %s2540_s6, 32 }
  0x38   :  { %p1944_p10 = scmp.ne.s32.totalorder %s2540_s6, %s1943_s18  ;;  %p1947_p11 = scmp.lt.u32.totalorder %s1943_s18, %s2540_s6 }
  0x3a   :  { %p1949_p12 = pnand %p1947_p11, %p1944_p10 }
  0x3c   :  { %1952 = shalt.err (!%p1949_p12)
}
  0x3d   :  { %s1953_s0 = scalar_lea.vmem %s61_s26, 32  ;;  %p1958_p0 = scmp.lt.s32.totalorder %s61_s26, %s61_s26 }
  0x3e   :  { %p1954_p13 = scmp.ne.s32.totalorder %s61_s26, %s1953_s0  ;;  %p1959_p1 = scmp.lt.s32.totalorder %s1953_s0, %s1953_s0 }
  0x40   :  { %p1960_p2 = por %p1959_p1, %p1958_p0 }
  0x42   :  { %p1961_p3 = pnand %p1960_p2, %p1954_p13 }
  0x44   :  { %1964 = shalt.err (!%p1961_p3)
}
  0x45   :  { %66 = dma.hbm_to_vmem [thread:$0]  %s2540_s6, 32, %s61_s26, [#allocation6], %s2046_s30, %s2046_s30, %s2047_s25  }
  0x46   :  { %s1965_s27 = scalar_lea.hbm %s2543_s9, 32 }
  0x47   :  { %p1966_p4 = scmp.ne.s32.totalorder %s2543_s9, %s1965_s27  ;;  %p1969_p5 = scmp.lt.u32.totalorder %s1965_s27, %s2543_s9 }
  0x49   :  { %p1971_p6 = pnand %p1969_p5, %p1966_p4 }
  0x4b   :  { %1974 = shalt.err (!%p1971_p6)
}
  0x4c   :  { %s1975_s20 = scalar_lea.vmem %s87_s29, 32  ;;  %p1980_p8 = scmp.lt.s32.totalorder %s87_s29, %s87_s29 }
  0x4d   :  { %p1976_p7 = scmp.ne.s32.totalorder %s87_s29, %s1975_s20  ;;  %p1981_p9 = scmp.lt.s32.totalorder %s1975_s20, %s1975_s20 }
  0x4f   :  { %p1982_p10 = por %p1981_p9, %p1980_p8 }
  0x51   :  { %p1983_p11 = pnand %p1982_p10, %p1976_p7 }
  0x53   :  { %1986 = shalt.err (!%p1983_p11)
}
  0x54   :  { %92 = dma.hbm_to_vmem [thread:$0]  %s2543_s9, 32, %s87_s29, [#allocation9], %s2046_s30, %s2046_s30, %s2047_s25  }
  0x55   :  { %2021 = dma.done.wait [#allocation3], 256  }
  0x56   :  { %2022 = vsyncadd [#allocation3], 4294967040 }
  0x57   :  { %2023 = dma.done.wait [#allocation6], 288  }
  0x58   :  { %2024 = vsyncadd [#allocation6], 4294967008 }
  0x59   :  { %2025 = dma.done.wait [#allocation9], 64  }
  0x5a   :  { %2026 = vsyncadd [#allocation9], 4294967232  ;;  %v125_v0 = vlaneseq  ;;  %v2050_v3 = vmov -1e+30   ;;  %v117_v5 = vld [vmem:[#allocation2] sm:$0xff]  ;;  %v118_v6 = vld [vmem:[#allocation2 + $0x8] sm:$0xff] }
  0x5b   :  { %v121_v7 = vld [vmem:[#allocation5] sm:$0xff]  ;;  %v119_v8 = vmul.f32 5.656854, %v117_v5  ;;  %v120_v9 = vmul.f32 5.656854, %v118_v6  ;;  %v122_v10 = vld [vmem:[#allocation5 + $0x8] sm:$0xff] }
  0x5c   :  { %v126_v1 = vshrl.u32 %v125_v0, 7  ;;  %v128_v2 = vand.u32 127, %v125_v0  ;;  %s2218_s9 = smov 0  }
  0x5d   :  { %v123_v11 = vadd.f32 %v121_v7, %v119_v8   ;;  %v124_v12 = vadd.f32 %v122_v10, %v120_v9  }
  0x5e   :  { %vm129_vm0 = vcmp.le.s32.totalorder %v128_v2, %v126_v1 }
  0x5f   :  { %v2212_v4 = vsel %vm129_vm0, 0.0, %v2050_v3 }
  0x60 LB: > { %v2051_v13 = vmov 0.0   ;;  %vm2052_vm1 = vmmov 0   ;;  %s1585_s30 = sshll.u32 %s2039_s9, 4  ;;  %v185_v16 = vpack.c.bf16 %v2031_v12, %v2035_v11  ;;  %vm204_vm2 = vcmask 261120   ;;  %s146_s17 = scalar_lea.vmem %s2537_s3, %s2039_s9  ;;  %s2039_s9 = sphi %s2218_s9, %s136_s9   ;;  %v2035_v11 = vphi %v123_v11, %v2550_v11   ;;  %v2031_v12 = vphi %v124_v12, %v2549_v12  }
  0x61   : > { %1635 = vmatprep.subr.bf16.mxu0 %v2051_v13  ;;  %1639 = vmatprep.mubr.msk.bf16.mxu0 %vm2052_vm1, %v2051_v13  ;;  %s141_s21 = scalar_lea.vmem %s2536_s2, %s1585_s30  ;;  %s2242_s15 = scalar_lea.vmem %s2538_s4, %s1585_s30  ;;  %v1547_v17 = vld [vmem:[%s146_s17] ss:$0 sm:$0xff]  ;;  %vm280_vm3 = vcmask 64512   ;;  %vm787_vm4 = vcmask 1043456   ;;  %vm1180_vm5 = vcmask 130048   ;;  %vm1182_vm6 = vcmask 195584  }
  0x62   : > { %1643 = vmatprep.subr.bf16.mxu1 %v2051_v13  ;;  %1645 = vmatprep.mubr.msk.bf16.mxu1 %vm2052_vm1, %v2051_v13  ;;  %v1827_v14 = vld [vmem:[%s141_s21] sm:$0xff]   ;;  %v1828_v15 = vld [vmem:[%s141_s21 + $0x8] sm:$0xff]   ;;  %s2247_s1 = scalar_lea.vmem %s2542_s8, %s1585_s30  ;;  %s2053_s18 = smov 104   ;;  %vm1403_vm7 = vcmask 523264  }
  0x63   : > { %1636 = vmatpush3.bf16.msra.mxu0 %v1827_v14  ;;  %s2054_s19 = smov 120   ;;  %s2055_s20 = smov 112  }
  0x64   : > { %1637 = vmatprep.subr.bf16.mxu0 %v2051_v13  ;;  %s2056_s6 = smov 96   ;;  %s2057_s26 = smov 64  }
  0x65   : > { %s2058_s30 = smov 8   ;;  %s2059_s25 = smov 16  }
  0x66   : > { %s2060_s29 = smov 24   ;;  %s154_s0 = scalar_lea.vmem %s2539_s5, %s2039_s9 }
  0x67   : > { %1638 = vmatpush3.bf16.msra.mxu0 %v1828_v15  ;;  %s158_s16 = scalar_lea.vmem [#allocation8], %s2039_s9  ;;  %s166_s17 = scalar_lea.vmem [#allocation10], %s2039_s9 }
  0x68   : > { %1649 = vmatprep.subr.bf16.mxu0 %v2051_v13  ;;  %s183_s21 = scalar_lea.vmem %s2547_s13, %s2039_s9 }
  0x6a   : > { %1640 = vmatmul.mubr.msk.bf16.vlgmr.msra.gmra.mrb[0].mxu0 %vm204_vm2, %v185_v16 }
  0x6b   : > { %1651 = vmatprep.mubr.msk.bf16.mxu0 %vm2052_vm1, %v2051_v13 }
 0x13d   : > { %v242_v18 = vpop.f32.mrb[0].mxu0 }
 0x13e   : > { %v243_v19 = vadd.f32 %v1547_v17, %v242_v18  ;;  %v1641_v20 = vpop.f32.mrb[1].mxu0 }
 0x13f   : > { %v245_v21 = vpop.f32.mrb[2].mxu0 }
 0x140   : > { %256 = vrot.lane.b32.xlu1 %v243_v19, %s2053_s18  ;;  %250 = vrot.lane.b32.xlu0 %v243_v19, %s2054_s19  ;;  %v1642_v22 = vpop.f32.mrb[3].mxu0  ;;  %v246_v23 = vadd.f32 %v1547_v17, %v245_v21  ;;  %v269_v24 = vpack.c.bf16 %v243_v19, %v243_v19 }
 0x142   : > { %v2271_v34 = vpack.c.bf16 %v246_v23, %v246_v23 }
 0x144   : > { %253 = vrot.lane.b32.xlu0 %v243_v19, %s2055_s20  ;;  %260 = vrot.lane.b32.xlu1 %v246_v23, %s2054_s19 }
 0x148   : > { %263 = vrot.lane.b32.xlu0 %v246_v23, %s2055_s20  ;;  %266 = vrot.lane.b32.xlu1 %v246_v23, %s2053_s18  ;;  %s179_s20 = scalar_lea.vmem %s2545_s11, %s2039_s9 }
 0x14c   : > { %278 = vrot.lane.b32.xlu0 %v269_v24, %s2056_s6 }
 0x1b2   : > { %v257_v25 = vpop.permute.xlu1 %256  ;;  %v251_v26 = vpop.permute.xlu0 %250 }
 0x1b3   : > { %v2260_v27 = vpack.c.bf16 %v251_v26, %v251_v26  ;;  %v2263_v30 = vpack.c.bf16 %v257_v25, %v257_v25 }
 0x1b5   : > { %328 = vrot.lane.b32.xlu1 %v2260_v27, %s2056_s6 }
 0x1b6   : > { %v254_v28 = vpop.permute.xlu0 %253  ;;  %v261_v29 = vpop.permute.xlu1 %260 }
 0x1b7   : > { %v2265_v31 = vpack.c.bf16 %v254_v28, %v254_v28  ;;  %v2269_v33 = vpack.c.bf16 %v261_v29, %v261_v29 }
 0x1b9   : > { %377 = vrot.lane.b32.xlu0 %v2265_v31, %s2056_s6  ;;  %426 = vrot.lane.b32.xlu1 %v2263_v30, %s2056_s6 }
 0x1ba   : > { %v264_v32 = vpop.permute.xlu0 %263  ;;  %v267_v35 = vpop.permute.xlu1 %266 }
 0x1bb   : > { %v2275_v37 = vpack.c.bf16 %v264_v32, %v264_v32  ;;  %v2277_v38 = vpack.c.bf16 %v267_v35, %v267_v35 }
 0x1bd   : > { %524 = vrot.lane.b32.xlu1 %v2269_v33, %s2056_s6  ;;  %475 = vrot.lane.b32.xlu0 %v2271_v34, %s2056_s6 }
 0x1be   : > { %v279_v36 = vpop.permute.xlu0 %278 }
 0x1bf   : > { %v285_v39 = vsel %vm280_vm3, %v279_v36, 0 }
 0x1c0   : > { %1644 = vmatpush3.bf16.xpose.msra.mxu1 %v285_v39 }
 0x1c1   : > { %622 = vrot.lane.b32.xlu1 %v2277_v38, %s2056_s6  ;;  %573 = vrot.lane.b32.xlu0 %v2275_v37, %s2056_s6 }
 0x1c2   : > { %1655 = vmatprep.subr.bf16.mxu1 %v2051_v13 }
 0x1c5   : > { %782 = vrot.lane.b32.xlu1 %v269_v24, %s2057_s26 }
 0x1c7   : > { %1646 = vmatmul.mubr.msk.bf16.vlgmr.msra.gmra.mrb[0].mxu1 %vm280_vm3, %v269_v24 }
 0x1c8   : > { %1657 = vmatprep.mubr.msk.bf16.mxu1 %vm2052_vm1, %v2051_v13 }
 0x227   : > { %v329_v40 = vpop.permute.xlu1 %328 }
 0x228   : > { %v334_v41 = vsel %vm280_vm3, %v329_v40, 0 }
 0x229   : > { %1650 = vmatpush3.bf16.xpose.msra.mxu0 %v334_v41 }
 0x22a   : > { %1661 = vmatprep.subr.bf16.mxu0 %v2051_v13 }
 0x22b   : > { %v378_v42 = vpop.permute.xlu0 %377  ;;  %v427_v44 = vpop.permute.xlu1 %426 }
 0x22c   : > { %v383_v43 = vsel %vm280_vm3, %v378_v42, 0  ;;  %v432_v45 = vsel %vm280_vm3, %v427_v44, 0 }
 0x22d   : > { %1656 = vmatpush3.bf16.xpose.msra.mxu1 %v383_v43 }
 0x22e   : > { %1667 = vmatprep.subr.bf16.mxu1 %v2051_v13 }
 0x22f   : > { %v476_v46 = vpop.permute.xlu0 %475  ;;  %v525_v48 = vpop.permute.xlu1 %524 }
 0x230   : > { %1652 = vmatmul.mubr.msk.bf16.vlgmr.msra.gmra.mrb[4].mxu0 %vm280_vm3, %v2260_v27  ;;  %v481_v47 = vsel %vm280_vm3, %v476_v46, 0  ;;  %v530_v49 = vsel %vm280_vm3, %v525_v48, 0 }
 0x231   : > { %1662 = vmatpush3.bf16.xpose.msra.mxu0 %v432_v45  ;;  %1663 = vmatprep.mubr.msk.bf16.mxu0 %vm2052_vm1, %v2051_v13 }
 0x232   : > { %1673 = vmatprep.subr.bf16.mxu0 %v2051_v13 }
 0x233   : > { %v574_v50 = vpop.permute.xlu0 %573  ;;  %v623_v51 = vpop.permute.xlu1 %622 }
 0x234   : > { %1658 = vmatmul.mubr.msk.bf16.vlgmr.msra.gmra.mrb[4].mxu1 %vm280_vm3, %v2265_v31  ;;  %v579_v52 = vsel %vm280_vm3, %v574_v50, 0  ;;  %v628_v53 = vsel %vm280_vm3, %v623_v51, 0 }
 0x235   : > { %1668 = vmatpush3.bf16.xpose.msra.mxu1 %v481_v47  ;;  %1669 = vmatprep.mubr.msk.bf16.mxu1 %vm2052_vm1, %v2051_v13 }
 0x236   : > { %1679 = vmatprep.subr.bf16.mxu1 %v2051_v13 }
 0x237   : > { %v783_v54 = vpop.permute.xlu1 %782 }
 0x238   : > { %1664 = vmatmul.mubr.msk.bf16.vlgmr.msra.gmra.mrb[8].mxu0 %vm280_vm3, %v2263_v30  ;;  %v789_v55 = vsel %vm787_vm4, %v783_v54, 0 }
 0x239   : > { %1674 = vmatpush3.bf16.xpose.msra.mxu0 %v530_v49  ;;  %1675 = vmatprep.mubr.msk.bf16.mxu0 %vm2052_vm1, %v2051_v13 }
 0x23a   : > { %1685 = vmatprep.subr.bf16.mxu0 %v2051_v13 }
 0x23c   : > { %1670 = vmatmul.mubr.msk.bf16.vlgmr.msra.gmra.mrb[8].mxu1 %vm280_vm3, %v2271_v34 }
 0x23d   : > { %1680 = vmatpush3.bf16.xpose.msra.mxu1 %v579_v52  ;;  %1681 = vmatprep.mubr.msk.bf16.mxu1 %vm2052_vm1, %v2051_v13 }
 0x23e   : > { %1691 = vmatprep.subr.bf16.mxu1 %v2051_v13 }
 0x240   : > { %1676 = vmatmul.mubr.msk.bf16.vlgmr.msra.gmra.mrb[12].mxu0 %vm280_vm3, %v2269_v33 }
 0x241   : > { %1686 = vmatpush3.bf16.xpose.msra.mxu0 %v628_v53  ;;  %1687 = vmatprep.mubr.msk.bf16.mxu0 %vm2052_vm1, %v2051_v13 }
 0x242   : > { %1697 = vmatprep.subr.bf16.mxu0 %v2051_v13 }
 0x244   : > { %1682 = vmatmul.mubr.msk.bf16.vlgmr.msra.gmra.mrb[12].mxu1 %vm280_vm3, %v2275_v37 }
 0x245   : > { %1692 = vmatpush3.bf16.msra.mxu1 %v789_v55  ;;  %1693 = vmatprep.mubr.msk.bf16.mxu1 %vm2052_vm1, %v2051_v13 }
 0x246   : > { %1703 = vmatprep.subr.bf16.mxu1 %v2051_v13 }
 0x248   : > { %1688 = vmatmul.mubr.msk.bf16.vlgmr.msra.gmra.mrb[16].mxu0 %vm280_vm3, %v2277_v38 }
 0x249   : > { %1699 = vmatprep.mubr.msk.bf16.mxu0 %vm2052_vm1, %v2051_v13 }
 0x29a   : > { %v321_v56 = vpop.f32.mrb[0].mxu1 }
 0x29b   : > { %v670_v57 = vmul.f32 0.35355338, %v321_v56  ;;  %v1647_v58 = vpop.f32.mrb[1].mxu1 }
 0x29c   : > { %v324_v59 = vpop.f32.mrb[2].mxu1 }
 0x29d   : > { %v2332_v60 = vadd.f32 %v670_v57, %v2212_v4  ;;  %v1648_v61 = vpop.f32.mrb[3].mxu1 }
 0x29f   : > { %v686_v62 = vsel %vm280_vm3, %v2332_v60, -inf }
 0x2a0   : > { %687 = vmax.xlane.f32.xlu0 %v686_v62 }
 0x303   : > { %v370_v63 = vpop.f32.mrb[4].mxu0 }
 0x304   : > { %v671_v0 = vmul.f32 0.35355338, %v370_v63  ;;  %v1653_v1 = vpop.f32.mrb[5].mxu0 }
 0x305   : > { %v373_v2 = vpop.f32.mrb[6].mxu0 }
 0x306   : > { %v2337_v3 = vadd.f32 %v671_v0, %v2212_v4  ;;  %v1654_v5 = vpop.f32.mrb[7].mxu0 }
 0x307   : > { %v419_v6 = vpop.f32.mrb[4].mxu1 }
 0x308   : > { %v672_v7 = vmul.f32 0.35355338, %v419_v6  ;;  %v1659_v8 = vpop.f32.mrb[5].mxu1  ;;  %v689_v9 = vsel %vm280_vm3, %v2337_v3, -inf }
 0x309   : > { %v422_v10 = vpop.f32.mrb[6].mxu1  ;;  %690 = vmax.xlane.f32.xlu1 %v689_v9 }
 0x30a   : > { %v680_v14 = vadd.f32 %v672_v7, %v2212_v4  ;;  %v1660_v15 = vpop.f32.mrb[7].mxu1 }
 0x30b   : > { %v468_v16 = vpop.f32.mrb[8].mxu0 }
 0x30c   : > { %v673_v17 = vmul.f32 0.35355338, %v468_v16  ;;  %v1665_v18 = vpop.f32.mrb[9].mxu0  ;;  %v692_v19 = vsel %vm280_vm3, %v680_v14, -inf }
 0x30d   : > { %693 = vmax.xlane.f32.xlu0 %v692_v19  ;;  %v471_v20 = vpop.f32.mrb[10].mxu0 }
 0x30e   : > { %v681_v21 = vadd.f32 %v673_v17, %v2212_v4  ;;  %v1666_v22 = vpop.f32.mrb[11].mxu0 }
 0x30f   : > { %v517_v23 = vpop.f32.mrb[8].mxu1 }
 0x310   : > { %v674_v24 = vmul.f32 0.35355338, %v517_v23  ;;  %v1671_v25 = vpop.f32.mrb[9].mxu1  ;;  %v695_v26 = vsel %vm280_vm3, %v681_v21, -inf }
 0x311   : > { %v520_v28 = vpop.f32.mrb[10].mxu1  ;;  %696 = vmax.xlane.f32.xlu0 %v695_v26 }
 0x312   : > { %v2346_v29 = vadd.f32 %v674_v24, %v2212_v4  ;;  %v1672_v32 = vpop.f32.mrb[11].mxu1 }
 0x313   : > { %v566_v35 = vpop.f32.mrb[12].mxu0 }
 0x314   : > { %v675_v36 = vmul.f32 0.35355338, %v566_v35  ;;  %v1677_v39 = vpop.f32.mrb[13].mxu0  ;;  %v698_v40 = vsel %vm280_vm3, %v2346_v29, -inf }
 0x315   : > { %699 = vmax.xlane.f32.xlu1 %v698_v40  ;;  %v569_v41 = vpop.f32.mrb[14].mxu0 }
 0x316   : > { %v2351_v42 = vadd.f32 %v675_v36, %v2212_v4  ;;  %v1678_v43 = vpop.f32.mrb[15].mxu0 }
 0x317   : > { %v615_v44 = vpop.f32.mrb[12].mxu1 }
 0x318   : > { %v676_v45 = vmul.f32 0.35355338, %v615_v44  ;;  %v1683_v46 = vpop.f32.mrb[13].mxu1  ;;  %v701_v47 = vsel %vm280_vm3, %v2351_v42, -inf }
 0x319   : > { %v618_v48 = vpop.f32.mrb[14].mxu1  ;;  %702 = vmax.xlane.f32.xlu0 %v701_v47 }
 0x31a   : > { %v684_v49 = vadd.f32 %v676_v45, %v2212_v4  ;;  %v1684_v50 = vpop.f32.mrb[15].mxu1 }
 0x31b   : > { %v664_v51 = vpop.f32.mrb[16].mxu0 }
 0x31c   : > { %v677_v52 = vmul.f32 0.35355338, %v664_v51  ;;  %v1689_v53 = vpop.f32.mrb[17].mxu0  ;;  %v704_v54 = vsel %vm280_vm3, %v684_v49, -inf }
 0x31d   : > { %705 = vmax.xlane.f32.xlu1 %v704_v54  ;;  %v667_v55 = vpop.f32.mrb[18].mxu0 }
 0x31e   : > { %v685_v56 = vadd.f32 %v677_v52, %v2212_v4  ;;  %v1690_v57 = vpop.f32.mrb[19].mxu0 }
 0x320   : > { %v707_v58 = vsel %vm280_vm3, %v685_v56, -inf }
 0x321   : > { %708 = vmax.xlane.f32.xlu0 %v707_v58 }
 0x32d   : > { %v688_v59 = vpop.xlane.xlu0 %687 }
 0x32e   : > { %879 = vrot.lane.b32.xlu1 %v2265_v31, %s2057_s26  ;;  %v710_v61 = vsub.f32 %v2332_v60, %v688_v59 }
 0x330   : > { %v718_v62 = vmul.f32 1.442695, %v710_v61 }
 0x332   : > { %927 = vrot.lane.b32.xlu1 %v2263_v30, %s2057_s26  ;;  %1837 = vpow2.f32 %v718_v62 }
 0x337   : > { %831 = vrot.lane.b32.xlu0 %v2260_v27, %s2057_s26 }
 0x33c   : > { %v2366_v63 = vpop.eup %1837 }
 0x33d   : > { %v734_v0 = vsel %vm280_vm3, %v2366_v63, 0.0 }
 0x356   : > { %735 = vadd.xlane.f32.xlu1 %v734_v0 }
 0x396   : > { %v691_v1 = vpop.xlane.xlu1 %690 }
 0x397   : > { %v711_v31 = vsub.f32 %v2337_v3, %v691_v1 }
 0x399   : > { %v720_v2 = vmul.f32 1.442695, %v711_v31 }
 0x39a   : > { %v694_v5 = vpop.xlane.xlu0 %693 }
 0x39b   : > { %1839 = vpow2.f32 %v720_v2  ;;  %v712_v30 = vsub.f32 %v680_v14, %v694_v5 }
 0x39d   : > { %v722_v6 = vmul.f32 1.442695, %v712_v30 }
 0x39e   : > { %v697_v27 = vpop.xlane.xlu0 %696 }
 0x39f   : > { %1841 = vpow2.f32 %v722_v6  ;;  %v713_v7 = vsub.f32 %v681_v21, %v697_v27 }
 0x3a1   : > { %v724_v60 = vmul.f32 1.442695, %v713_v7 }
 0x3a2   : > { %v700_v20 = vpop.xlane.xlu1 %699 }
 0x3a3   : > { %1843 = vpow2.f32 %v724_v60  ;;  %v714_v21 = vsub.f32 %v2346_v29, %v700_v20 }
 0x3a5   : > { %v2371_v8 = vpop.eup %1839  ;;  %v726_v24 = vmul.f32 1.442695, %v714_v21 }
 0x3a6   : > { %v737_v9 = vsel %vm280_vm3, %v2371_v8, 0.0  ;;  %v703_v15 = vpop.xlane.xlu0 %702 }
 0x3a7   : > { %738 = vadd.xlane.f32.xlu0 %v737_v9  ;;  %v715_v23 = vsub.f32 %v2351_v42, %v703_v15  ;;  %1845 = vpow2.f32 %v726_v24 }
 0x3a9   : > { %v2375_v10 = vpop.eup %1841  ;;  %v728_v26 = vmul.f32 1.442695, %v715_v23 }
 0x3aa   : > { %v740_v3 = vsel %vm280_vm3, %v2375_v10, 0.0  ;;  %v706_v22 = vpop.xlane.xlu1 %705 }
 0x3ab   : > { %741 = vadd.xlane.f32.xlu1 %v740_v3  ;;  %v716_v25 = vsub.f32 %v684_v49, %v706_v22  ;;  %1847 = vpow2.f32 %v728_v26 }
 0x3ad   : > { %v2379_v14 = vpop.eup %1843  ;;  %v730_v28 = vmul.f32 1.442695, %v716_v25 }
 0x3ae   : > { %v709_v16 = vpop.xlane.xlu0 %708  ;;  %v743_v17 = vsel %vm280_vm3, %v2379_v14, 0.0  ;;  %v880_v36 = vpop.permute.xlu1 %879 }
 0x3af   : > { %744 = vadd.xlane.f32.xlu0 %v743_v17  ;;  %v717_v32 = vsub.f32 %v685_v56, %v709_v16  ;;  %1849 = vpow2.f32 %v730_v28  ;;  %v885_v49 = vsel %vm787_vm4, %v880_v36, 0 }
 0x3b1   : > { %v732_v35 = vmul.f32 1.442695, %v717_v32 }
 0x3b2   : > { %v832_v18 = vpop.permute.xlu0 %831  ;;  %v928_v39 = vpop.permute.xlu1 %927 }
 0x3b3   : > { %v837_v19 = vsel %vm787_vm4, %v832_v18, 0  ;;  %1851 = vpow2.f32 %v732_v35  ;;  %v933_v57 = vsel %vm787_vm4, %v928_v39, 0 }
 0x3b4   : > { %1698 = vmatpush3.bf16.msra.mxu0 %v837_v19 }
 0x3b5   : > { %1709 = vmatprep.subr.bf16.mxu0 %v2051_v13 }
 0x3bc   : > { %1023 = vrot.lane.b32.xlu1 %v2269_v33, %s2057_s26  ;;  %v2391_v33 = vpop.eup %1845 }
 0x3bd   : > { %v746_v29 = vsel %vm280_vm3, %v2391_v33, 0.0 }
 0x3c5   : > { %975 = vrot.lane.b32.xlu0 %v2271_v34, %s2057_s26  ;;  %v2393_v34 = vpop.eup %1847 }
 0x3c6   : > { %v2397_v40 = vpop.eup %1849  ;;  %v749_v43 = vsel %vm280_vm3, %v2393_v34, 0.0 }
 0x3c7   : > { %v752_v42 = vsel %vm280_vm3, %v2397_v40, 0.0  ;;  %v2403_v44 = vpop.eup %1851 }
 0x3c8   : > { %v755_v45 = vsel %vm280_vm3, %v2403_v44, 0.0 }
 0x3e0   : > { %747 = vadd.xlane.f32.xlu1 %v746_v29 }
 0x3e3   : > { %v736_v41 = vpop.xlane.xlu1 %735 }
 0x3e4   : > { %1853 = vrcp.f32 %v736_v41  ;;  %753 = vadd.xlane.f32.xlu1 %v752_v42  ;;  %750 = vadd.xlane.f32.xlu0 %v749_v43 }
 0x3e8   : > { %756 = vadd.xlane.f32.xlu0 %v755_v45 }
 0x3ee   : > { %v1854_v46 = vpop.eup %1853 }
 0x3ef   : > { %v766_v47 = vmul.f32 %v1854_v46, %v2366_v63 }
 0x3f1   : > { %v774_v48 = vpack.c.bf16 %v766_v47, %v766_v47 }
 0x3f3   : > { %1694 = vmatmul.mubr.msk.bf16.vlgmr.msra.gmra.mrb[16].mxu1 %vm280_vm3, %v774_v48  ;;  %v1830_v48 = vld [vmem:[%s2242_s15 + $0x8] sm:$0xff]  }
 0x3f4   : > { %1704 = vmatpush3.bf16.msra.mxu1 %v885_v49  ;;  %1705 = vmatprep.mubr.msk.bf16.mxu1 %vm2052_vm1, %v2051_v13 }
 0x3f5   : > { %1119 = vrot.lane.b32.xlu1 %v2277_v38, %s2057_s26  ;;  %1715 = vmatprep.subr.bf16.mxu1 %v2051_v13 }
 0x3fe   : > { %1071 = vrot.lane.b32.xlu0 %v2275_v37, %s2057_s26 }
 0x434   : > { %v739_v50 = vpop.xlane.xlu0 %738 }
 0x435   : > { %1855 = vrcp.f32 %v739_v50 }
 0x438   : > { %v742_v51 = vpop.xlane.xlu1 %741 }
 0x439   : > { %1857 = vrcp.f32 %v742_v51 }
 0x43c   : > { %v745_v52 = vpop.xlane.xlu0 %744  ;;  %v1024_v63 = vpop.permute.xlu1 %1023 }
 0x43d   : > { %1859 = vrcp.f32 %v745_v52  ;;  %v1029_v1 = vsel %vm787_vm4, %v1024_v63, 0 }
 0x43f   : > { %v1856_v53 = vpop.eup %1855 }
 0x440   : > { %v767_v54 = vmul.f32 %v1856_v53, %v2371_v8  ;;  %v976_v58 = vpop.permute.xlu0 %975 }
 0x441   : > { %v981_v62 = vsel %vm787_vm4, %v976_v58, 0 }
 0x442   : > { %v775_v55 = vpack.c.bf16 %v767_v54, %v767_v54 }
 0x443   : > { %v1858_v56 = vpop.eup %1857 }
 0x444   : > { %v768_v38 = vmul.f32 %v1858_v56, %v2375_v10  ;;  %1700 = vmatmul.mubr.msk.bf16.vlgmr.msra.gmra.mrb[20].mxu0 %vm280_vm3, %v775_v55 }
 0x445   : > { %1710 = vmatpush3.bf16.msra.mxu0 %v933_v57  ;;  %1711 = vmatprep.mubr.msk.bf16.mxu0 %vm2052_vm1, %v2051_v13 }
 0x446   : > { %v776_v37 = vpack.c.bf16 %v768_v38, %v768_v38  ;;  %1721 = vmatprep.subr.bf16.mxu0 %v2051_v13 }
 0x447   : > { %v1860_v59 = vpop.eup %1859 }
 0x448   : > { %v769_v61 = vmul.f32 %v1860_v59, %v2379_v14  ;;  %1706 = vmatmul.mubr.msk.bf16.vlgmr.msra.gmra.mrb[20].mxu1 %vm280_vm3, %v776_v37 }
 0x449   : > { %1716 = vmatpush3.bf16.msra.mxu1 %v981_v62  ;;  %1717 = vmatprep.mubr.msk.bf16.mxu1 %vm2052_vm1, %v2051_v13 }
 0x44a   : > { %v777_v0 = vpack.c.bf16 %v769_v61, %v769_v61  ;;  %1727 = vmatprep.subr.bf16.mxu1 %v2051_v13 }
 0x44c   : > { %1712 = vmatmul.mubr.msk.bf16.vlgmr.msra.gmra.mrb[24].mxu0 %vm280_vm3, %v777_v0 }
 0x44d   : > { %1722 = vmatpush3.bf16.msra.mxu0 %v1029_v1  ;;  %1723 = vmatprep.mubr.msk.bf16.mxu0 %vm2052_vm1, %v2051_v13 }
 0x44e   : > { %1733 = vmatprep.subr.bf16.mxu0 %v2051_v13 }
 0x46d   : > { %v748_v31 = vpop.xlane.xlu1 %747 }
 0x46e   : > { %1861 = vrcp.f32 %v748_v31 }
 0x471   : > { %v754_v2 = vpop.xlane.xlu1 %753  ;;  %v751_v5 = vpop.xlane.xlu0 %750 }
 0x472   : > { %1863 = vrcp.f32 %v754_v2 }
 0x473   : > { %1865 = vrcp.f32 %v751_v5 }
 0x475   : > { %v757_v30 = vpop.xlane.xlu0 %756  ;;  %v1120_v14 = vpop.permute.xlu1 %1119 }
 0x476   : > { %1867 = vrcp.f32 %v757_v30  ;;  %v1125_v18 = vsel %vm787_vm4, %v1120_v14, 0  ;;  %v1567_v14 = vld [vmem:[%s154_s0] ss:$0 sm:$0xff] }
 0x478   : > { %v1862_v6 = vpop.eup %1861 }
 0x479   : > { %v770_v27 = vmul.f32 %v1862_v6, %v2391_v33  ;;  %v1072_v7 = vpop.permute.xlu0 %1071 }
 0x47a   : > { %v1077_v10 = vsel %vm787_vm4, %v1072_v7, 0 }
 0x47b   : > { %v778_v60 = vpack.c.bf16 %v770_v27, %v770_v27 }
 0x47c   : > { %v1864_v8 = vpop.eup %1863 }
 0x47d   : > { %v1866_v9 = vpop.eup %1865  ;;  %1718 = vmatmul.mubr.msk.bf16.vlgmr.msra.gmra.mrb[24].mxu1 %vm280_vm3, %v778_v60  ;;  %v772_v3 = vmul.f32 %v1864_v8, %v2397_v40 }
 0x47e   : > { %v771_v15 = vmul.f32 %v1866_v9, %v2393_v34  ;;  %1728 = vmatpush3.bf16.msra.mxu1 %v1077_v10  ;;  %1729 = vmatprep.mubr.msk.bf16.mxu1 %vm2052_vm1, %v2051_v13 }
 0x47f   : > { %1739 = vmatprep.subr.bf16.mxu1 %v2051_v13  ;;  %v780_v19 = vpack.c.bf16 %v772_v3, %v772_v3 }
 0x480   : > { %v779_v16 = vpack.c.bf16 %v771_v15, %v771_v15  ;;  %v1868_v17 = vpop.eup %1867 }
 0x481   : > { %v773_v20 = vmul.f32 %v1868_v17, %v2403_v44  ;;  %v1829_v44 = vld [vmem:[%s2242_s15] sm:$0xff]   ;;  %s1588_s15 = sshll.u32 %s2039_s9, 5 }
 0x482   : > { %1724 = vmatmul.mubr.msk.bf16.vlgmr.msra.gmra.mrb[28].mxu0 %vm280_vm3, %v779_v16  ;;  %s2481_s27 = scalar_lea.vmem %s2544_s10, %s1588_s15 }
 0x483   : > { %1734 = vmatpush3.bf16.msra.mxu0 %v1125_v18  ;;  %1735 = vmatprep.mubr.msk.bf16.mxu0 %vm2052_vm1, %v2051_v13  ;;  %v781_v21 = vpack.c.bf16 %v773_v20, %v773_v20 }
 0x484   : > { %1747 = vmatprep.subr.bf16.mxu0 %v2051_v13 }
 0x485   : > { %1730 = vmatmul.mubr.msk.bf16.vlgmr.msra.gmra.mrb[28].mxu1 %vm280_vm3, %v780_v19 }
 0x486   : > { %1743 = vmatprep.mubr.msk.bf16.mxu1 %vm2052_vm1, %v2051_v13  ;;  %1740 = vmatpush3.bf16.msra.mxu1 %v1829_v44 }
 0x487   : > { %1741 = vmatprep.subr.bf16.mxu1 %v2051_v13 }
 0x48a   : > { %1736 = vmatmul.mubr.msk.bf16.vlgmr.msra.gmra.mrb[32].mxu0 %vm280_vm3, %v781_v21  ;;  %1742 = vmatpush3.bf16.msra.mxu1 %v1830_v48 }
 0x48b   : > { %1751 = vmatprep.mubr.msk.bf16.mxu0 %vm2052_vm1, %v2051_v13  ;;  %1755 = vmatprep.subr.bf16.mxu1 %v2051_v13 }
 0x4c6   : > { %v825_v22 = vpop.f32.mrb[16].mxu1 }
 0x4c7   : > { %v1695_v23 = vpop.f32.mrb[17].mxu1 }
 0x4c8   : > { %v828_v24 = vpop.f32.mrb[18].mxu1 }
 0x4c9   : > { %v1696_v25 = vpop.f32.mrb[19].mxu1 }
 0x517   : > { %v873_v26 = vpop.f32.mrb[20].mxu0 }
 0x518   : > { %v1701_v28 = vpop.f32.mrb[21].mxu0 }
 0x519   : > { %v876_v32 = vpop.f32.mrb[22].mxu0 }
 0x51a   : > { %v1702_v35 = vpop.f32.mrb[23].mxu0 }
 0x51b   : > { %v921_v36 = vpop.f32.mrb[20].mxu1 }
 0x51c   : > { %v1707_v33 = vpop.f32.mrb[21].mxu1 }
 0x51d   : > { %v924_v34 = vpop.f32.mrb[22].mxu1 }
 0x51e   : > { %v1708_v39 = vpop.f32.mrb[23].mxu1 }
 0x51f   : > { %v969_v29 = vpop.f32.mrb[24].mxu0 }
 0x520   : > { %v1713_v40 = vpop.f32.mrb[25].mxu0 }
 0x521   : > { %v972_v41 = vpop.f32.mrb[26].mxu0  ;;  %v1832_v40 = vld [vmem:[%s2247_s1 + $0x8] sm:$0xff]  }
 0x522   : > { %v1714_v42 = vpop.f32.mrb[27].mxu0  ;;  %v1833_v41 = vld [vmem:[%s2481_s27] sm:$0xff]  }
 0x523   : > { %v1834_v42 = vld [vmem:[%s2481_s27 + $0x8] sm:$0xff]  }
 0x550   : > { %v1017_v43 = vpop.f32.mrb[24].mxu1 }
 0x551   : > { %v1719_v45 = vpop.f32.mrb[25].mxu1 }
 0x552   : > { %v1020_v46 = vpop.f32.mrb[26].mxu1 }
 0x553   : > { %v1720_v47 = vpop.f32.mrb[27].mxu1 }
 0x555   : > { %v1065_v49 = vpop.f32.mrb[28].mxu0 }
 0x556   : > { %v1812_v50 = vpack.i.bf16 %v1065_v49, %v873_v26  ;;  %v1725_v51 = vpop.f32.mrb[29].mxu0 }
 0x557   : > { %v1068_v52 = vpop.f32.mrb[30].mxu0 }
 0x558   : > { %1813 = vrot.lane.b32.xlu0 %v1812_v50, %s2058_s30  ;;  %v1726_v53 = vpop.f32.mrb[31].mxu0  ;;  %v1113_v54 = vpop.f32.mrb[28].mxu1  ;;  %s181_s30 = scalar_lea.vmem %s2546_s12, %s2039_s9 }
 0x559   : > { %v1817_v55 = vpack.i.bf16 %v1113_v54, %v921_v36  ;;  %v1731_v56 = vpop.f32.mrb[29].mxu1 }
 0x55a   : > { %v1116_v57 = vpop.f32.mrb[30].mxu1 }
 0x55b   : > { %1818 = vrot.lane.b32.xlu1 %v1817_v55, %s2059_s25  ;;  %v1732_v38 = vpop.f32.mrb[31].mxu1  ;;  %v1572_v55 = vld [vmem:[%s158_s16] ss:$0 sm:$0xff] }
 0x55d   : > { %v1161_v58 = vpop.f32.mrb[32].mxu0 }
 0x55e   : > { %v1822_v37 = vpack.i.bf16 %v1161_v58, %v969_v29  ;;  %v1737_v59 = vpop.f32.mrb[33].mxu0  ;;  %v1831_v29 = vld [vmem:[%s2247_s1] sm:$0xff]   ;;  %s156_s1 = scalar_lea.vmem [#allocation7], %s2039_s9  ;;  %s136_s9 = sadd.s32 1, %s2039_s9  }
 0x55f   : > { %v1164_v61 = vpop.f32.mrb[34].mxu0  ;;  %1748 = vmatpush3.bf16.msra.mxu0 %v1831_v29  ;;  %v1571_v50 = vld [vmem:[%s156_s1] ss:$0 sm:$0xff]  ;;  %v1836_v59 = vld [vmem:[%s2481_s27 + $0x18] sm:$0xff]   ;;  %p133_p12 = scmp.ge.s32.totalorder %s136_s9, 2  }
 0x560   : > { %1823 = vrot.lane.b32.xlu0 %v1822_v37, %s2060_s29  ;;  %v1738_v62 = vpop.f32.mrb[35].mxu0  ;;  %1749 = vmatprep.subr.bf16.mxu0 %v2051_v13  ;;  %v1835_v37 = vld [vmem:[%s2481_s27 + $0x10] sm:$0xff]   ;;  %v1573_v61 = vld [vmem:[%s166_s17] ss:$0 sm:$0xff]  ;;  %s2061_s22 = smov (%p133_p12), [#allocation11]  }
 0x561   :  { %s1500_s0 = sshll.u32 (%p133_p12), %s2061_s22, 4  ;;  %s1501_s0 = int_to_ptr.vmem [resolvable:$true] %s1500_s0 }
 0x562   :  { %s1987_s15 = scalar_lea.vmem (%p133_p12), %s1501_s0, 256  ;;  %p1992_p0 = scmp.lt.s32.totalorder (%p133_p12), %s1501_s0, %s1501_s0 }
 0x563   : > { %1750 = vmatpush3.bf16.msra.mxu0 %v1832_v40  ;;  %v1584_v40 = vld [vmem:[%s183_s21] ss:$0 sm:$0xff]  ;;  %p1988_p13 = scmp.ne.s32.totalorder (%p133_p12), %s1501_s0, %s1987_s15  ;;  %p1993_p1 = scmp.lt.s32.totalorder (%p133_p12), %s1987_s15, %s1987_s15 }
 0x565   :  { %p1994_p2 = por (%p133_p12), %p1993_p1, %p1992_p0 }
 0x567   :  { %p1995_p3 = pnand (%p133_p12), %p1994_p2, %p1988_p13 }
 0x5ca   : > { %v1814_v63 = vpop.permute.xlu0 %1813 }
 0x5cb   : > { %v1816_v1 = vunpack.i.h.bf16 %v1814_v63  ;;  %v1815_v31 = vunpack.i.l.bf16 %v1814_v63 }
 0x5cd   : > { %v1819_v0 = vpop.permute.xlu1 %1818  ;;  %v1196_v6 = vsel %vm280_vm3, %v1017_v43, %v1816_v1  ;;  %v1179_v27 = vsel %vm280_vm3, %v825_v22, %v1815_v31 }
 0x5ce   : > { %v1821_v2 = vunpack.i.h.bf16 %v1819_v0  ;;  %v1820_v5 = vunpack.i.l.bf16 %v1819_v0 }
 0x5d0   : > { %v1181_v8 = vsel %vm1180_vm5, %v1179_v27, %v1820_v5  ;;  %v1197_v9 = vsel %vm1180_vm5, %v1196_v6, %v1821_v2 }
 0x5d2   : > { %v1824_v30 = vpop.permute.xlu0 %1823 }
 0x5d3   : > { %v1826_v7 = vunpack.i.h.bf16 %v1824_v30  ;;  %v1825_v60 = vunpack.i.l.bf16 %v1824_v30 }
 0x5d5   : > { %v1198_v10 = vsel %vm1182_vm6, %v1197_v9, %v1826_v7  ;;  %v1183_v15 = vsel %vm1182_vm6, %v1181_v8, %v1825_v60 }
 0x5d6   : > { %v1199_v3 = vpack.c.bf16 %v1198_v10, %v1183_v15 }
 0x5d8   : > { %1744 = vmatmul.mubr.msk.bf16.vlgmr.msra.gmra.mrb[32].mxu1 %vm204_vm2, %v1199_v3 }
 0x5d9   : > { %1763 = vmatprep.mubr.msk.bf16.mxu1 %vm2052_vm1, %v2051_v13  ;;  %1756 = vmatpush3.bf16.msra.mxu1 %v1833_v41 }
 0x5da   : > { %1757 = vmatprep.subr.bf16.mxu1 %v2051_v13 }
 0x5dd   : > { %1758 = vmatpush3.bf16.msra.mxu1 %v1834_v42 }
 0x5de   : > { %1759 = vmatprep.subr.bf16.mxu1 %v2051_v13 }
 0x5e1   : > { %1760 = vmatpush3.bf16.msra.mxu1 %v1835_v37 }
 0x5e2   : > { %1761 = vmatprep.subr.bf16.mxu1 %v2051_v13  ;;  %v1577_v13 = vld [vmem:[%s179_s20] ss:$0 sm:$0xff] }
 0x5e5   : > { %1762 = vmatpush3.bf16.msra.mxu1 %v1836_v59 }
 0x6ab   : > { %v1255_v16 = vpop.f32.mrb[32].mxu1 }
 0x6ac   : > { %v1256_v17 = vadd.f32 %v1567_v14, %v1255_v16  ;;  %v1745_v18 = vpop.f32.mrb[33].mxu1 }
 0x6ad   : > { %v1258_v19 = vpop.f32.mrb[34].mxu1 }
 0x6ae   : > { %v1259_v20 = vadd.f32 %v1567_v14, %v1258_v19  ;;  %v1746_v21 = vpop.f32.mrb[35].mxu1  ;;  %v1262_v22 = vadd.f32 %v2035_v11, %v1256_v17 }
 0x6b0   : > { %v1264_v23 = vsel %vm204_vm2, %v1262_v22, 0.0  ;;  %v1263_v24 = vadd.f32 %v2031_v12, %v1259_v20 }
 0x6b1   : > { %1265 = vadd.xlane.f32.xlu1 %v1264_v23 }
 0x6b2   : > { %v1267_v25 = vsel %vm204_vm2, %v1263_v24, 0.0 }
 0x6b3   : > { %1268 = vadd.xlane.f32.xlu0 %v1267_v25 }
 0x73e   : > { %v1266_v26 = vpop.xlane.xlu1 %1265 }
 0x73f   : > { %v1271_v28 = vmul.f32 0.03125, %v1266_v26 }
 0x740   : > { %v1269_v32 = vpop.xlane.xlu0 %1268 }
 0x741   : > { %v1273_v35 = vsub.f32 %v1262_v22, %v1271_v28  ;;  %v1272_v36 = vmul.f32 0.03125, %v1269_v32 }
 0x743   : > { %v1274_v33 = vsub.f32 %v1263_v24, %v1272_v36  ;;  %v1275_v34 = vmul.f32 %v1273_v35, %v1273_v35 }
 0x745   : > { %v1277_v11 = vsel %vm204_vm2, %v1275_v34, 0.0  ;;  %v1276_v39 = vmul.f32 %v1274_v33, %v1274_v33 }
 0x746   : > { %1278 = vadd.xlane.f32.xlu0 %v1277_v11 }
 0x747   : > { %v1280_v12 = vsel %vm204_vm2, %v1276_v39, 0.0  ;;  %v1583_v39 = vld [vmem:[%s181_s30] ss:$0 sm:$0xff] }
 0x748   : > { %1281 = vadd.xlane.f32.xlu1 %v1280_v12 }
 0x7d3   : > { %v1279_v43 = vpop.xlane.xlu0 %1278 }
 0x7d4   : > { %v1283_v44 = vmul.f32 0.03125, %v1279_v43 }
 0x7d5   : > { %v1282_v45 = vpop.xlane.xlu1 %1281 }
 0x7d6   : > { %v1285_v46 = vadd.f32 1e-05, %v1283_v44  ;;  %v1284_v47 = vmul.f32 0.03125, %v1282_v45 }
 0x7d8   : > { %1869 = vrsqrt.f32 %v1285_v46  ;;  %v1286_v48 = vadd.f32 1e-05, %v1284_v47 }
 0x7da   : > { %1871 = vrsqrt.f32 %v1286_v48 }
 0x7e2   : > { %v1870_v49 = vpop.eup %1869 }
 0x7e3   : > { %v1289_v51 = vmul.f32 %v1870_v49, %v1273_v35 }
 0x7e4   : > { %v1872_v52 = vpop.eup %1871 }
 0x7e5   : > { %v1297_v53 = vmul.f32 %v1571_v50, %v1289_v51  ;;  %v1290_v54 = vmul.f32 %v1872_v52, %v1274_v33 }
 0x7e7   : > { %v1298_v56 = vmul.f32 %v1571_v50, %v1290_v54  ;;  %v1305_v57 = vadd.f32 %v1572_v55, %v1297_v53 }
 0x7e9   : > { %v1306_v38 = vadd.f32 %v1572_v55, %v1298_v56 }
 0x7eb   : > { %v1307_v58 = vpack.c.bf16 %v1306_v38, %v1305_v57 }
 0x7ed   : > { %1752 = vmatmul.mubr.msk.bf16.vlgmr.msra.gmra.mrb[36].mxu0 %vm204_vm2, %v1307_v58 }
 0x8c0   : > { %v1363_v62 = vpop.f32.mrb[36].mxu0 }
 0x8c1   : > { %v1364_v63 = vadd.f32 %v1573_v61, %v1363_v62  ;;  %v1753_v0 = vpop.f32.mrb[37].mxu0 }
 0x8c2   : > { %v1366_v1 = vpop.f32.mrb[38].mxu0 }
 0x8c3   : > { %v1367_v31 = vadd.f32 %v1573_v61, %v1366_v1  ;;  %v1754_v2 = vpop.f32.mrb[39].mxu0  ;;  %v1370_v5 = vmax.f32 %v1364_v63, 0.0 }
 0x8c5   : > { %v1371_v30 = vmax.f32 %v1367_v31, 0.0 }
 0x8c7   : > { %v1372_v6 = vpack.c.bf16 %v1371_v30, %v1370_v5 }
 0x8c9   : > { %1764 = vmatmul.mubr.msk.bf16.vlgmr.msra.gmra.mrb[36].mxu1 %vm1403_vm7, %v1372_v6 }
 0x99c   : > { %v1441_v27 = vpop.f32.mrb[36].mxu1 }
 0x99d   : > { %v1442_v7 = vadd.f32 %v1577_v13, %v1441_v27  ;;  %v1765_v60 = vpop.f32.mrb[37].mxu1 }
 0x99e   : > { %v1444_v8 = vpop.f32.mrb[38].mxu1 }
 0x99f   : > { %v1445_v9 = vadd.f32 %v1577_v13, %v1444_v8  ;;  %v1766_v10 = vpop.f32.mrb[39].mxu1  ;;  %v1448_v15 = vadd.f32 %v1442_v7, %v1305_v57 }
 0x9a1   : > { %v1450_v3 = vsel %vm204_vm2, %v1448_v15, 0.0  ;;  %v1449_v14 = vadd.f32 %v1445_v9, %v1306_v38 }
 0x9a2   : > { %1451 = vadd.xlane.f32.xlu0 %v1450_v3 }
 0x9a3   : > { %v1453_v16 = vsel %vm204_vm2, %v1449_v14, 0.0 }
 0x9a4   : > { %1454 = vadd.xlane.f32.xlu1 %v1453_v16 }
 0xa2f   : > { %v1452_v17 = vpop.xlane.xlu0 %1451 }
 0xa30   : > { %v1456_v18 = vmul.f32 0.03125, %v1452_v17 }
 0xa31   : > { %v1455_v19 = vpop.xlane.xlu1 %1454 }
 0xa32   : > { %v1458_v20 = vsub.f32 %v1448_v15, %v1456_v18  ;;  %v1457_v21 = vmul.f32 0.03125, %v1455_v19 }
 0xa34   : > { %v1459_v22 = vsub.f32 %v1449_v14, %v1457_v21  ;;  %v1460_v23 = vmul.f32 %v1458_v20, %v1458_v20 }
 0xa36   : > { %v1462_v24 = vsel %vm204_vm2, %v1460_v23, 0.0  ;;  %v1461_v25 = vmul.f32 %v1459_v22, %v1459_v22 }
 0xa37   : > { %1463 = vadd.xlane.f32.xlu0 %v1462_v24 }
 0xa38   : > { %v1465_v26 = vsel %vm204_vm2, %v1461_v25, 0.0 }
 0xa39   : > { %1466 = vadd.xlane.f32.xlu1 %v1465_v26 }
 0xac4   : > { %v1464_v28 = vpop.xlane.xlu0 %1463 }
 0xac5   : > { %v1468_v32 = vmul.f32 0.03125, %v1464_v28 }
 0xac6   : > { %v1467_v35 = vpop.xlane.xlu1 %1466 }
 0xac7   : > { %v1470_v36 = vadd.f32 1e-05, %v1468_v32  ;;  %v1469_v33 = vmul.f32 0.03125, %v1467_v35 }
 0xac9   : > { %1873 = vrsqrt.f32 %v1470_v36  ;;  %v1471_v34 = vadd.f32 1e-05, %v1469_v33 }
 0xacb   : > { %1875 = vrsqrt.f32 %v1471_v34 }
 0xad3   : > { %v1874_v11 = vpop.eup %1873 }
 0xad4   : > { %v1474_v12 = vmul.f32 %v1874_v11, %v1458_v20 }
 0xad5   : > { %v1876_v29 = vpop.eup %1875 }
 0xad6   : > { %v1482_v41 = vmul.f32 %v1583_v39, %v1474_v12  ;;  %v1475_v42 = vmul.f32 %v1876_v29, %v1459_v22  ;;  %135 = sbr.rel (!%p133_p12) target bundleno = 96 (0x60), region = 115 }
 0xad8   : > { %v1490_v43 = vadd.f32 %v1584_v40, %v1482_v41   ;;  %v1483_v44 = vmul.f32 %v1583_v39, %v1475_v42 }
 0xada   : > { %v1491_v45 = vadd.f32 %v1584_v40, %v1483_v44   ;;  %v2550_v11 = vmov %v1490_v43  ;;  %1493 = vst.msk [vmem:[#allocation11] sm:$0xff] (%p133_p12), %vm204_vm2, %v1490_v43 }
 0xadc   : > { %v2549_v12 = vmov %v1491_v45  ;;  %1494 = vst.msk [vmem:[#allocation11 + $0x8] sm:$0xff] (%p133_p12), %vm204_vm2, %v1491_v45 }
 0xadd   :  { %1998 = shalt.err (!%p1995_p3)
}
 0xade   :  { %s1999_s27 = scalar_lea.hbm %s2548_s14, 256 }
 0xadf   :  { %p2000_p4 = scmp.ne.s32.totalorder %s2548_s14, %s1999_s27  ;;  %p2003_p5 = scmp.lt.u32.totalorder %s1999_s27, %s2548_s14 }
 0xae1   :  { %p2005_p6 = pnand %p2003_p5, %p2000_p4 }
 0xae3   :  { %2008 = shalt.err (!%p2005_p6)
}
 0xae4   :  { %1506 = dma.vmem_to_hbm [thread:$0]  %s1501_s0, 256, %s2548_s14, [#allocation4], %s2042_s23, %s2042_s23, %s2043_s24  }
 0xae5   :  { %2027 = dma.done.wait [#allocation4], 256  }
 0xae6   :  { %2028 = vsyncadd [#allocation4], 4294967040 }
 0xae7   :  { %1510 = vsyncpa [#allocation3], 1 }
 0xae8   :  { %1511 = vsyncpa [#allocation6], 1 }
 0xae9   :  { %1512 = vsyncpa [#allocation9], 1 }
 0xaea   :  { %1513 = vsyncpa [#allocation4], 1 }

</bundles_post_ra>
